<compile_context>
chip_gen: v5e
topology: v5e:2x2
jax: 0.10.0
libtpu: 0.0.40
codegen_flags: <defaults>
</compile_context>

<pallas_src>
import math
import functools

import jax
import jax.numpy as jnp
from jax import lax
from jax.experimental import pallas as pl
from jax.experimental.pallas import tpu as pltpu


def _mha_kernel(xq_ref, xkv_ref, wq_ref, bq_ref, wkv_ref, bkv_ref,
                wo_ref, bo_ref, o_ref, ctx_ref, *, n_heads, exact):
    # xq_ref : (1, TQ, D) query rows of the current tile (compute dtype)
    # xkv_ref: (1, S,  D) full sequence (for K/V)        (compute dtype)
    # wq_ref : (D, D)     fused per-head query weights (in, out)
    # wkv_ref: (D, 2D)    fused [Wk | Wv]
    # ctx_ref: (TQ, D)    f32 VMEM scratch: per-head context slab
    TQ, D = xq_ref.shape[1], xq_ref.shape[2]
    d_k = D // n_heads
    scale = 1.0 / math.sqrt(d_k)
    prec = lax.Precision.HIGHEST if exact else lax.Precision.DEFAULT

    xq = xq_ref[0]                                   # (TQ, D)
    xkv = xkv_ref[0]                                 # (S, D)
    cdt = xq.dtype

    # Fused wide projections (single matmul each), f32 accumulate, bias add,
    # softmax scale folded into q.
    q = (jnp.dot(xq, wq_ref[...], precision=prec,
                 preferred_element_type=jnp.float32) + bq_ref[...]) * scale
    kv = jnp.dot(xkv, wkv_ref[...], precision=prec,
                 preferred_element_type=jnp.float32) + bkv_ref[...]
    q = q.astype(cdt)                                # (TQ, D)
    kv = kv.astype(cdt)                              # (S, 2D)

    # Attention core per head (H small, static). Static lane slices of the
    # fused slabs; each head's context goes straight into the (TQ, D)
    # scratch slab -> no concatenate, per-head intermediates die early.
    for h in range(n_heads):
        q_h = q[:, h * d_k:(h + 1) * d_k]            # (TQ, d_k)
        k_h = kv[:, h * d_k:(h + 1) * d_k]           # (S, d_k)
        v_h = kv[:, D + h * d_k:D + (h + 1) * d_k]   # (S, d_k)

        # Contract last dims directly (no explicit transpose of k).
        s = lax.dot_general(q_h, k_h, (((1,), (1,)), ((), ())),
                            precision=prec,
                            preferred_element_type=jnp.float32)   # (TQ, S)

        # Numerically-stable softmax in f32.
        m = jnp.max(s, axis=-1, keepdims=True)
        e = jnp.exp(s - m)
        denom = jnp.sum(e, axis=-1, keepdims=True)
        if exact:
            attn = e / denom                          # exact divide (f32 check path)
        else:
            attn = e * pl.reciprocal(denom, approx=True)   # EUP slot (bf16 path)
        # dropout == identity (eval mode)

        ctx_ref[:, h * d_k:(h + 1) * d_k] = jnp.dot(
            attn.astype(cdt), v_h, precision=prec,
            preferred_element_type=jnp.float32)

    # Single wide output projection over the lane-dense (TQ, D) context slab.
    out = jnp.dot(ctx_ref[...].astype(cdt), wo_ref[...], precision=prec,
                  preferred_element_type=jnp.float32) + bo_ref[...]
    o_ref[0] = out.astype(o_ref.dtype)


def _pick_q_tile(S):
    for t in (256, 128, 64, 32, 16, 8):
        if S % t == 0:
            return t
    return S  # small / odd S: single full-sequence block


def multi_head_attention(x, params, *, n_heads, compute_dtype=jnp.bfloat16,
                         q_tile=None):
    """x: (B, S, D) float32. params: stacked per-head weights + W_o."""
    B, S, D = x.shape
    TQ = q_tile if q_tile is not None else _pick_q_tile(S)
    n_qt = pl.cdiv(S, TQ)
    exact = jnp.dtype(compute_dtype) == jnp.dtype(jnp.float32)
    cdt = compute_dtype

    # Wrapper-side packing: per-head weights -> wide fused operands, cast once
    # to the MXU compute dtype (one-time XLA work, halves weight/act DMA for
    # the bf16 path). Biases stay f32 (added to f32 accumulators).
    wq_f = jnp.transpose(params["wq"], (1, 0, 2)).reshape(D, D).astype(cdt)
    wk_f = jnp.transpose(params["wk"], (1, 0, 2)).reshape(D, D)
    wv_f = jnp.transpose(params["wv"], (1, 0, 2)).reshape(D, D)
    wkv_f = jnp.concatenate([wk_f, wv_f], axis=1).astype(cdt)        # (D, 2D)
    bq_f = params["bq"].reshape(1, D).astype(jnp.float32)
    bkv_f = jnp.concatenate([params["bk"].reshape(1, D),
                             params["bv"].reshape(1, D)],
                            axis=1).astype(jnp.float32)              # (1, 2D)
    wo_f = params["wo"].astype(cdt)                                  # (D, D)
    bo_f = params["bo"].reshape(1, D).astype(jnp.float32)
    x_c = x.astype(cdt)

    kernel = functools.partial(_mha_kernel, n_heads=n_heads, exact=exact)

    const = lambda shape: pl.BlockSpec(shape, lambda b, qi: (0,) * len(shape))

    return pl.pallas_call(
        kernel,
        out_shape=jax.ShapeDtypeStruct((B, S, D), x.dtype),
        grid_spec=pltpu.PrefetchScalarGridSpec(
            num_scalar_prefetch=0,
            grid=(B, n_qt),
            in_specs=[
                pl.BlockSpec((1, TQ, D), lambda b, qi: (b, qi, 0)),  # x (q rows)
                pl.BlockSpec((1, S, D), lambda b, qi: (b, 0, 0)),    # x (full, K/V)
                const((D, D)),          # fused Wq
                const((1, D)),          # fused bq
                const((D, 2 * D)),      # fused [Wk | Wv]
                const((1, 2 * D)),      # fused [bk | bv]
                const((D, D)),          # Wo ((in, out) orientation)
                const((1, D)),          # bo
            ],
            out_specs=pl.BlockSpec((1, TQ, D), lambda b, qi: (b, qi, 0)),
            scratch_shapes=[pltpu.VMEM((TQ, D), jnp.float32)],
        ),
        compiler_params=pltpu.CompilerParams(
            dimension_semantics=("parallel", "parallel")),
    )(x_c, x_c, wq_f, bq_f, wkv_f, bkv_f, wo_f, bo_f)


def init_params(key, d_model, n_heads):
    d_k = d_model // n_heads
    keys = jax.random.split(key, 8)
    scale_in = 1.0 / math.sqrt(d_model)
    # Stacked per-head weights, already transposed to (in, out) = (D, d_k).
    return {
        "wq": jax.random.uniform(keys[0], (n_heads, d_model, d_k),
                                 jnp.float32, -scale_in, scale_in),
        "bq": jax.random.uniform(keys[1], (n_heads, d_k),
                                 jnp.float32, -scale_in, scale_in),
        "wk": jax.random.uniform(keys[2], (n_heads, d_model, d_k),
                                 jnp.float32, -scale_in, scale_in),
        "bk": jax.random.uniform(keys[3], (n_heads, d_k),
                                 jnp.float32, -scale_in, scale_in),
        "wv": jax.random.uniform(keys[4], (n_heads, d_model, d_k),
                                 jnp.float32, -scale_in, scale_in),
        "bv": jax.random.uniform(keys[5], (n_heads, d_k),
                                 jnp.float32, -scale_in, scale_in),
        "wo": jax.random.uniform(keys[6], (d_model, d_model),
                                 jnp.float32, -scale_in, scale_in),
        "bo": jax.random.uniform(keys[7], (1, d_model),
                                 jnp.float32, -scale_in, scale_in),
    }


def reference_mha(x, params, *, n_heads):
    """Pure-JAX reference mirroring the PyTorch forward (eval mode).

    Uses HIGHEST matmul precision so it is a true-f32 reference on TPU
    (the backend default otherwise down-converts f32 dot inputs).
    """
    B, S, D = x.shape
    d_k = D // n_heads
    hp = lax.Precision.HIGHEST
    outs = []
    for h in range(n_heads):
        q = jnp.einsum("bsd,dk->bsk", x, params["wq"][h], precision=hp) + params["bq"][h]
        k = jnp.einsum("bsd,dk->bsk", x, params["wk"][h], precision=hp) + params["bk"][h]
        v = jnp.einsum("bsd,dk->bsk", x, params["wv"][h], precision=hp) + params["bv"][h]
        scores = jnp.einsum("bqd,bkd->bqk", q, k, precision=hp) / math.sqrt(d_k)
        attn = jax.nn.softmax(scores, axis=-1)
        outs.append(jnp.einsum("bqk,bkd->bqd", attn, v, precision=hp))
    concat = jnp.concatenate(outs, axis=-1)
    return (jnp.einsum("bsd,de->bse", concat, params["wo"], precision=hp)
            + params["bo"][0])


if __name__ == "__main__":
    B, S, d_model, n_heads = 2, 8, 32, 4
    key = jax.random.PRNGKey(0)
    kx, kp = jax.random.split(key)

    x = jax.random.normal(kx, (B, S, d_model), jnp.float32)
    params = init_params(kp, d_model, n_heads)
    ref = reference_mha(x, params, n_heads=n_heads)

    # 1) Exact-math path (f32 MXU inputs, HIGHEST precision, exact divide)
    #    — validates kernel structure tightly.
    out_f32 = multi_head_attention(x, params, n_heads=n_heads,
                                   compute_dtype=jnp.float32)
    out_f32 = jax.block_until_ready(out_f32)
    assert out_f32.shape == (B, S, d_model)
    assert jnp.allclose(out_f32, ref, atol=2e-4, rtol=2e-4), "f32 mismatch"

    # 2) Optimized default path (bf16 MXU inputs, f32 accumulate/softmax,
    #    approx EUP reciprocal).
    out_bf16 = multi_head_attention(x, params, n_heads=n_heads)
    out_bf16 = jax.block_until_ready(out_bf16)
    assert out_bf16.shape == (B, S, d_model)
    assert jnp.allclose(out_bf16, ref, atol=3e-2, rtol=3e-2), "bf16 mismatch"

    print("KERNEL_OK")
</pallas_src>

<mosaic_0001>
module attributes {stable_mosaic.version = 11 : i64} {
  func.func @_mha_kernel(%arg0: i32, %arg1: i32, %arg2: memref<1x8x32xf32, #tpu.memory_space<vmem>>, %arg3: memref<1x8x32xf32, #tpu.memory_space<vmem>>, %arg4: memref<32x32xf32, #tpu.memory_space<vmem>>, %arg5: memref<1x32xf32, #tpu.memory_space<vmem>>, %arg6: memref<32x64xf32, #tpu.memory_space<vmem>>, %arg7: memref<1x64xf32, #tpu.memory_space<vmem>>, %arg8: memref<32x32xf32, #tpu.memory_space<vmem>>, %arg9: memref<1x32xf32, #tpu.memory_space<vmem>>, %arg10: memref<1x8x32xf32, #tpu.memory_space<vmem>>, %arg11: memref<8x32xf32, #tpu.memory_space<vmem>>) attributes {dimension_semantics = [#tpu.dimension_semantics<parallel>, #tpu.dimension_semantics<parallel>], iteration_bounds = array<i64: 2, 1>, scalar_prefetch = 0 : i64, scratch_operands = 1 : i64, tpu.core_type = #tpu.core_type<tc>, window_params = [{transform_indices = @transform_0, window_bounds = array<i64: 1, 8, 32>}, {transform_indices = @transform_1, window_bounds = array<i64: 1, 8, 32>}, {pipeline_mode = #tpu.pipeline_mode<synchronous>, transform_indices = @transform_2, window_bounds = array<i64: 32, 32>}, {pipeline_mode = #tpu.pipeline_mode<synchronous>, transform_indices = @transform_3, window_bounds = array<i64: 1, 32>}, {pipeline_mode = #tpu.pipeline_mode<synchronous>, transform_indices = @transform_4, window_bounds = array<i64: 32, 64>}, {pipeline_mode = #tpu.pipeline_mode<synchronous>, transform_indices = @transform_5, window_bounds = array<i64: 1, 64>}, {pipeline_mode = #tpu.pipeline_mode<synchronous>, transform_indices = @transform_6, window_bounds = array<i64: 32, 32>}, {pipeline_mode = #tpu.pipeline_mode<synchronous>, transform_indices = @transform_7, window_bounds = array<i64: 1, 32>}, {transform_indices = @transform_8, window_bounds = array<i64: 1, 8, 32>}]} {
    %c0 = arith.constant 0 : index
    %c0_0 = arith.constant 0 : index
    %c0_1 = arith.constant 0 : index
    %0 = vector.load %arg2[%c0, %c0_0, %c0_1] : memref<1x8x32xf32, #tpu.memory_space<vmem>>, vector<1x8x32xf32>
    %1 = vector.shape_cast %0 : vector<1x8x32xf32> to vector<8x32xf32>
    %c0_2 = arith.constant 0 : index
    %c0_3 = arith.constant 0 : index
    %c0_4 = arith.constant 0 : index
    %2 = vector.load %arg3[%c0_2, %c0_3, %c0_4] : memref<1x8x32xf32, #tpu.memory_space<vmem>>, vector<1x8x32xf32>
    %3 = vector.shape_cast %2 : vector<1x8x32xf32> to vector<8x32xf32>
    %c0_5 = arith.constant 0 : index
    %c0_6 = arith.constant 0 : index
    %4 = vector.load %arg4[%c0_5, %c0_6] : memref<32x32xf32, #tpu.memory_space<vmem>>, vector<32x32xf32>
    %cst = arith.constant dense<0.000000e+00> : vector<8x32xf32>
    %5 = tpu.matmul %1, %4, %cst {dimension_numbers = #tpu.dot_dimension_numbers<[1], [0], [0], [1], [0, 0, 1, 1], [], []>, precision = #tpu.contract_precision<fp32>} : vector<8x32xf32>, vector<32x32xf32>, vector<8x32xf32> -> vector<8x32xf32>
    %c0_7 = arith.constant 0 : index
    %c0_8 = arith.constant 0 : index
    %6 = vector.load %arg5[%c0_7, %c0_8] : memref<1x32xf32, #tpu.memory_space<vmem>>, vector<1x32xf32>
    %7 = vector.broadcast %6 : vector<1x32xf32> to vector<8x32xf32>
    %8 = arith.addf %5, %7 : vector<8x32xf32>
    %cst_9 = arith.constant 0.353553385 : f32
    %9 = vector.broadcast %cst_9 : f32 to vector<8x32xf32>
    %10 = arith.mulf %8, %9 : vector<8x32xf32>
    %c0_10 = arith.constant 0 : index
    %c0_11 = arith.constant 0 : index
    %11 = vector.load %arg6[%c0_10, %c0_11] : memref<32x64xf32, #tpu.memory_space<vmem>>, vector<32x64xf32>
    %cst_12 = arith.constant dense<0.000000e+00> : vector<8x64xf32>
    %12 = tpu.matmul %3, %11, %cst_12 {dimension_numbers = #tpu.dot_dimension_numbers<[1], [0], [0], [1], [0, 0, 1, 1], [], []>, precision = #tpu.contract_precision<fp32>} : vector<8x32xf32>, vector<32x64xf32>, vector<8x64xf32> -> vector<8x64xf32>
    %c0_13 = arith.constant 0 : index
    %c0_14 = arith.constant 0 : index
    %13 = vector.load %arg7[%c0_13, %c0_14] : memref<1x64xf32, #tpu.memory_space<vmem>>, vector<1x64xf32>
    %14 = vector.broadcast %13 : vector<1x64xf32> to vector<8x64xf32>
    %15 = arith.addf %12, %14 : vector<8x64xf32>
    %16 = vector.extract_strided_slice %10 {offsets = [0, 0], sizes = [8, 8], strides = [1, 1]} : vector<8x32xf32> to vector<8x8xf32>
    %17 = vector.extract_strided_slice %15 {offsets = [0, 0], sizes = [8, 8], strides = [1, 1]} : vector<8x64xf32> to vector<8x8xf32>
    %18 = vector.extract_strided_slice %15 {offsets = [0, 32], sizes = [8, 8], strides = [1, 1]} : vector<8x64xf32> to vector<8x8xf32>
    %cst_15 = arith.constant dense<0.000000e+00> : vector<8x8xf32>
    %19 = tpu.matmul %16, %17, %cst_15 {dimension_numbers = #tpu.dot_dimension_numbers<[1], [1], [0], [0], [0, 0, 1, 0], [], []>, precision = #tpu.contract_precision<fp32>} : vector<8x8xf32>, vector<8x8xf32>, vector<8x8xf32> -> vector<8x8xf32>
    %cst_16 = arith.constant dense<0xFF800000> : vector<8xf32>
    %20 = vector.multi_reduction <maximumf>, %19, %cst_16 [1] : vector<8x8xf32> to vector<8xf32>
    %21 = vector.shape_cast %20 : vector<8xf32> to vector<8x1xf32>
    %22 = vector.broadcast %21 : vector<8x1xf32> to vector<8x8xf32>
    %23 = arith.subf %19, %22 : vector<8x8xf32>
    %24 = math.exp %23 : vector<8x8xf32>
    %cst_17 = arith.constant dense<0.000000e+00> : vector<8xf32>
    %25 = vector.multi_reduction <add>, %24, %cst_17 [1] : vector<8x8xf32> to vector<8xf32>
    %26 = vector.shape_cast %25 : vector<8xf32> to vector<8x1xf32>
    %27 = vector.broadcast %26 : vector<8x1xf32> to vector<8x8xf32>
    %28 = arith.divf %24, %27 : vector<8x8xf32>
    %cst_18 = arith.constant dense<0.000000e+00> : vector<8x8xf32>
    %29 = tpu.matmul %28, %18, %cst_18 {dimension_numbers = #tpu.dot_dimension_numbers<[1], [0], [0], [1], [0, 0, 1, 1], [], []>, precision = #tpu.contract_precision<fp32>} : vector<8x8xf32>, vector<8x8xf32>, vector<8x8xf32> -> vector<8x8xf32>
    %c0_19 = arith.constant 0 : index
    %c0_20 = arith.constant 0 : index
    %30 = vector.load %arg11[%c0_19, %c0_20] : memref<8x32xf32, #tpu.memory_space<vmem>>, vector<8x8xf32>
    tpu.vector_store %arg11[%c0_19, %c0_20], %29 {strides = array<i32>} : memref<8x32xf32, #tpu.memory_space<vmem>>, vector<8x8xf32>,
    %31 = vector.extract_strided_slice %10 {offsets = [0, 8], sizes = [8, 8], strides = [1, 1]} : vector<8x32xf32> to vector<8x8xf32>
    %32 = vector.extract_strided_slice %15 {offsets = [0, 8], sizes = [8, 8], strides = [1, 1]} : vector<8x64xf32> to vector<8x8xf32>
    %33 = vector.extract_strided_slice %15 {offsets = [0, 40], sizes = [8, 8], strides = [1, 1]} : vector<8x64xf32> to vector<8x8xf32>
    %cst_21 = arith.constant dense<0.000000e+00> : vector<8x8xf32>
    %34 = tpu.matmul %31, %32, %cst_21 {dimension_numbers = #tpu.dot_dimension_numbers<[1], [1], [0], [0], [0, 0, 1, 0], [], []>, precision = #tpu.contract_precision<fp32>} : vector<8x8xf32>, vector<8x8xf32>, vector<8x8xf32> -> vector<8x8xf32>
    %cst_22 = arith.constant dense<0xFF800000> : vector<8xf32>
    %35 = vector.multi_reduction <maximumf>, %34, %cst_22 [1] : vector<8x8xf32> to vector<8xf32>
    %36 = vector.shape_cast %35 : vector<8xf32> to vector<8x1xf32>
    %37 = vector.broadcast %36 : vector<8x1xf32> to vector<8x8xf32>
    %38 = arith.subf %34, %37 : vector<8x8xf32>
    %39 = math.exp %38 : vector<8x8xf32>
    %cst_23 = arith.constant dense<0.000000e+00> : vector<8xf32>
    %40 = vector.multi_reduction <add>, %39, %cst_23 [1] : vector<8x8xf32> to vector<8xf32>
    %41 = vector.shape_cast %40 : vector<8xf32> to vector<8x1xf32>
    %42 = vector.broadcast %41 : vector<8x1xf32> to vector<8x8xf32>
    %43 = arith.divf %39, %42 : vector<8x8xf32>
    %cst_24 = arith.constant dense<0.000000e+00> : vector<8x8xf32>
    %44 = tpu.matmul %43, %33, %cst_24 {dimension_numbers = #tpu.dot_dimension_numbers<[1], [0], [0], [1], [0, 0, 1, 1], [], []>, precision = #tpu.contract_precision<fp32>} : vector<8x8xf32>, vector<8x8xf32>, vector<8x8xf32> -> vector<8x8xf32>
    %c0_25 = arith.constant 0 : index
    %c8 = arith.constant 8 : index
    %45 = vector.load %arg11[%c0_25, %c8] : memref<8x32xf32, #tpu.memory_space<vmem>>, vector<8x8xf32>
    tpu.vector_store %arg11[%c0_25, %c8], %44 {strides = array<i32>} : memref<8x32xf32, #tpu.memory_space<vmem>>, vector<8x8xf32>,
    %46 = vector.extract_strided_slice %10 {offsets = [0, 16], sizes = [8, 8], strides = [1, 1]} : vector<8x32xf32> to vector<8x8xf32>
    %47 = vector.extract_strided_slice %15 {offsets = [0, 16], sizes = [8, 8], strides = [1, 1]} : vector<8x64xf32> to vector<8x8xf32>
    %48 = vector.extract_strided_slice %15 {offsets = [0, 48], sizes = [8, 8], strides = [1, 1]} : vector<8x64xf32> to vector<8x8xf32>
    %cst_26 = arith.constant dense<0.000000e+00> : vector<8x8xf32>
    %49 = tpu.matmul %46, %47, %cst_26 {dimension_numbers = #tpu.dot_dimension_numbers<[1], [1], [0], [0], [0, 0, 1, 0], [], []>, precision = #tpu.contract_precision<fp32>} : vector<8x8xf32>, vector<8x8xf32>, vector<8x8xf32> -> vector<8x8xf32>
    %cst_27 = arith.constant dense<0xFF800000> : vector<8xf32>
    %50 = vector.multi_reduction <maximumf>, %49, %cst_27 [1] : vector<8x8xf32> to vector<8xf32>
    %51 = vector.shape_cast %50 : vector<8xf32> to vector<8x1xf32>
    %52 = vector.broadcast %51 : vector<8x1xf32> to vector<8x8xf32>
    %53 = arith.subf %49, %52 : vector<8x8xf32>
    %54 = math.exp %53 : vector<8x8xf32>
    %cst_28 = arith.constant dense<0.000000e+00> : vector<8xf32>
    %55 = vector.multi_reduction <add>, %54, %cst_28 [1] : vector<8x8xf32> to vector<8xf32>
    %56 = vector.shape_cast %55 : vector<8xf32> to vector<8x1xf32>
    %57 = vector.broadcast %56 : vector<8x1xf32> to vector<8x8xf32>
    %58 = arith.divf %54, %57 : vector<8x8xf32>
    %cst_29 = arith.constant dense<0.000000e+00> : vector<8x8xf32>
    %59 = tpu.matmul %58, %48, %cst_29 {dimension_numbers = #tpu.dot_dimension_numbers<[1], [0], [0], [1], [0, 0, 1, 1], [], []>, precision = #tpu.contract_precision<fp32>} : vector<8x8xf32>, vector<8x8xf32>, vector<8x8xf32> -> vector<8x8xf32>
    %c0_30 = arith.constant 0 : index
    %c16 = arith.constant 16 : index
    %60 = vector.load %arg11[%c0_30, %c16] : memref<8x32xf32, #tpu.memory_space<vmem>>, vector<8x8xf32>
    tpu.vector_store %arg11[%c0_30, %c16], %59 {strides = array<i32>} : memref<8x32xf32, #tpu.memory_space<vmem>>, vector<8x8xf32>,
    %61 = vector.extract_strided_slice %10 {offsets = [0, 24], sizes = [8, 8], strides = [1, 1]} : vector<8x32xf32> to vector<8x8xf32>
    %62 = vector.extract_strided_slice %15 {offsets = [0, 24], sizes = [8, 8], strides = [1, 1]} : vector<8x64xf32> to vector<8x8xf32>
    %63 = vector.extract_strided_slice %15 {offsets = [0, 56], sizes = [8, 8], strides = [1, 1]} : vector<8x64xf32> to vector<8x8xf32>
    %cst_31 = arith.constant dense<0.000000e+00> : vector<8x8xf32>
    %64 = tpu.matmul %61, %62, %cst_31 {dimension_numbers = #tpu.dot_dimension_numbers<[1], [1], [0], [0], [0, 0, 1, 0], [], []>, precision = #tpu.contract_precision<fp32>} : vector<8x8xf32>, vector<8x8xf32>, vector<8x8xf32> -> vector<8x8xf32>
    %cst_32 = arith.constant dense<0xFF800000> : vector<8xf32>
    %65 = vector.multi_reduction <maximumf>, %64, %cst_32 [1] : vector<8x8xf32> to vector<8xf32>
    %66 = vector.shape_cast %65 : vector<8xf32> to vector<8x1xf32>
    %67 = vector.broadcast %66 : vector<8x1xf32> to vector<8x8xf32>
    %68 = arith.subf %64, %67 : vector<8x8xf32>
    %69 = math.exp %68 : vector<8x8xf32>
    %cst_33 = arith.constant dense<0.000000e+00> : vector<8xf32>
    %70 = vector.multi_reduction <add>, %69, %cst_33 [1] : vector<8x8xf32> to vector<8xf32>
    %71 = vector.shape_cast %70 : vector<8xf32> to vector<8x1xf32>
    %72 = vector.broadcast %71 : vector<8x1xf32> to vector<8x8xf32>
    %73 = arith.divf %69, %72 : vector<8x8xf32>
    %cst_34 = arith.constant dense<0.000000e+00> : vector<8x8xf32>
    %74 = tpu.matmul %73, %63, %cst_34 {dimension_numbers = #tpu.dot_dimension_numbers<[1], [0], [0], [1], [0, 0, 1, 1], [], []>, precision = #tpu.contract_precision<fp32>} : vector<8x8xf32>, vector<8x8xf32>, vector<8x8xf32> -> vector<8x8xf32>
    %c0_35 = arith.constant 0 : index
    %c24 = arith.constant 24 : index
    %75 = vector.load %arg11[%c0_35, %c24] : memref<8x32xf32, #tpu.memory_space<vmem>>, vector<8x8xf32>
    tpu.vector_store %arg11[%c0_35, %c24], %74 {strides = array<i32>} : memref<8x32xf32, #tpu.memory_space<vmem>>, vector<8x8xf32>,
    %c0_36 = arith.constant 0 : index
    %c0_37 = arith.constant 0 : index
    %76 = vector.load %arg11[%c0_36, %c0_37] : memref<8x32xf32, #tpu.memory_space<vmem>>, vector<8x32xf32>
    %c0_38 = arith.constant 0 : index
    %c0_39 = arith.constant 0 : index
    %77 = vector.load %arg8[%c0_38, %c0_39] : memref<32x32xf32, #tpu.memory_space<vmem>>, vector<32x32xf32>
    %cst_40 = arith.constant dense<0.000000e+00> : vector<8x32xf32>
    %78 = tpu.matmul %76, %77, %cst_40 {dimension_numbers = #tpu.dot_dimension_numbers<[1], [0], [0], [1], [0, 0, 1, 1], [], []>, precision = #tpu.contract_precision<fp32>} : vector<8x32xf32>, vector<32x32xf32>, vector<8x32xf32> -> vector<8x32xf32>
    %c0_41 = arith.constant 0 : index
    %c0_42 = arith.constant 0 : index
    %79 = vector.load %arg9[%c0_41, %c0_42] : memref<1x32xf32, #tpu.memory_space<vmem>>, vector<1x32xf32>
    %80 = vector.broadcast %79 : vector<1x32xf32> to vector<8x32xf32>
    %81 = arith.addf %78, %80 : vector<8x32xf32>
    %c0_43 = arith.constant 0 : index
    %c0_44 = arith.constant 0 : index
    %c0_45 = arith.constant 0 : index
    %82 = vector.load %arg10[%c0_43, %c0_44, %c0_45] : memref<1x8x32xf32, #tpu.memory_space<vmem>>, vector<1x8x32xf32>
    %83 = vector.shape_cast %82 : vector<1x8x32xf32> to vector<8x32xf32>
    %84 = vector.shape_cast %81 : vector<8x32xf32> to vector<1x8x32xf32>
    tpu.vector_store %arg10[%c0_43, %c0_44, %c0_45], %84 {strides = array<i32>} : memref<1x8x32xf32, #tpu.memory_space<vmem>>, vector<1x8x32xf32>,
    return
  }
  func.func @transform_0(%arg0: i32, %arg1: i32) -> (i32, i32, i32) {
    %c0_i32 = arith.constant 0 : i32
    %c0_i32_0 = arith.constant 0 : i32
    return %arg0, %arg1, %c0_i32 : i32, i32, i32
  }
  func.func @transform_1(%arg0: i32, %arg1: i32) -> (i32, i32, i32) {
    %c0_i32 = arith.constant 0 : i32
    %c0_i32_0 = arith.constant 0 : i32
    %c0_i32_1 = arith.constant 0 : i32
    return %arg0, %c0_i32, %c0_i32_0 : i32, i32, i32
  }
  func.func @transform_2(%arg0: i32, %arg1: i32) -> (i32, i32) {
    %c0_i32 = arith.constant 0 : i32
    %c0_i32_0 = arith.constant 0 : i32
    %c0_i32_1 = arith.constant 0 : i32
    return %c0_i32, %c0_i32_0 : i32, i32
  }
  func.func @transform_3(%arg0: i32, %arg1: i32) -> (i32, i32) {
    %c0_i32 = arith.constant 0 : i32
    %c0_i32_0 = arith.constant 0 : i32
    %c0_i32_1 = arith.constant 0 : i32
    return %c0_i32, %c0_i32_0 : i32, i32
  }
  func.func @transform_4(%arg0: i32, %arg1: i32) -> (i32, i32) {
    %c0_i32 = arith.constant 0 : i32
    %c0_i32_0 = arith.constant 0 : i32
    %c0_i32_1 = arith.constant 0 : i32
    return %c0_i32, %c0_i32_0 : i32, i32
  }
  func.func @transform_5(%arg0: i32, %arg1: i32) -> (i32, i32) {
    %c0_i32 = arith.constant 0 : i32
    %c0_i32_0 = arith.constant 0 : i32
    %c0_i32_1 = arith.constant 0 : i32
    return %c0_i32, %c0_i32_0 : i32, i32
  }
  func.func @transform_6(%arg0: i32, %arg1: i32) -> (i32, i32) {
    %c0_i32 = arith.constant 0 : i32
    %c0_i32_0 = arith.constant 0 : i32
    %c0_i32_1 = arith.constant 0 : i32
    return %c0_i32, %c0_i32_0 : i32, i32
  }
  func.func @transform_7(%arg0: i32, %arg1: i32) -> (i32, i32) {
    %c0_i32 = arith.constant 0 : i32
    %c0_i32_0 = arith.constant 0 : i32
    %c0_i32_1 = arith.constant 0 : i32
    return %c0_i32, %c0_i32_0 : i32, i32
  }
  func.func @transform_8(%arg0: i32, %arg1: i32) -> (i32, i32, i32) {
    %c0_i32 = arith.constant 0 : i32
    %c0_i32_0 = arith.constant 0 : i32
    return %arg0, %arg1, %c0_i32 : i32, i32, i32
  }
}

</mosaic_0001>

<bundles_post_ra>
// kernel: tpu_custom_call.1
= control target key start
LH: loop header
LB: loop body
LE: loop exit
PB: predicated region body
PF: predicated region fallthrough
CT: control target
= control target key end

     0   :  { %s3308_s0 = inlined_call_operand.hbm [shape: f32[2,8,32], index: 0, kind: input, shape index: {}]   ;;  %s3309_s1 = inlined_call_operand.hbm [shape: f32[2,8,32], index: 1, kind: input, shape index: {}]   ;;  %s3310_s2 = inlined_call_operand.hbm [shape: f32[32,32], index: 2, kind: input, shape index: {}]   ;;  %s3311_s3 = inlined_call_operand.vmem [shape: f32[1,32], index: 3, kind: input, shape index: {}]   ;;  %s3312_s4 = inlined_call_operand.hbm [shape: f32[32,64], index: 4, kind: input, shape index: {}]   ;;  %s3313_s5 = inlined_call_operand.vmem [shape: f32[1,64], index: 5, kind: input, shape index: {}]   ;;  %s3314_s6 = inlined_call_operand.hbm [shape: f32[32,32], index: 6, kind: input, shape index: {}]   ;;  %s3315_s7 = inlined_call_operand.vmem [shape: f32[1,32], index: 7, kind: input, shape index: {}]   ;;  %s3316_s8 = inlined_call_operand.hbm [shape: f32[2,8,32], index: 8, kind: output, shape index: {}]  }
   0x1   :  { %3322 = sst [smem:[#allocation24_spill]] %s3310_s2 }
   0x2   :  { %3323 = sst [smem:[#allocation25_spill]] %s3312_s4 }
   0x3   :  { %3324 = sst [smem:[#allocation26_spill]] %s3314_s6 }
   0x4   :  { %13 = vsyncpa [#allocation4], 0 }
   0x5   :  { %15 = vsyncpa [#allocation4 + $0x1], 0 }
   0x6   :  { %16 = vsyncpa [#allocation7], 0 }
   0x7   :  { %18 = vsyncpa [#allocation7 + $0x1], 0 }
   0x8   :  { %19 = vsyncpa [#allocation10], 0 }
   0x9   :  { %20 = vsyncpa [#allocation5], 0 }
   0xa   :  { %22 = vsyncpa [#allocation5 + $0x1], 0  ;;  %s2965_s27 = smov 0   ;;  %s2967_s28 = smov 0  }
   0xb   :  { %s2969_s29 = smov 0   ;;  %s2971_s30 = smov 0  }
   0xc   :  { %s2973_s9 = smov 0   ;;  %s2975_s10 = smov 0  }
   0xd LB: > { %3325 = sst [smem:[#allocation18_spill]] %s2883_s27  ;;  %s2996_s11 = sadd.s32 4294967295, %s2903_s10   ;;  %s2903_s10 = sphi %s2975_s10, %s28_s10   ;;  %s2899_s9 = sphi %s2973_s9, %s3345_s9   ;;  %s2895_s30 = sphi %s2971_s30, %s3344_s30   ;;  %s2891_s29 = sphi %s2969_s29, %s3343_s29   ;;  %s2887_s28 = sphi %s2967_s28, %s3347_s28   ;;  %s2883_s27 = sphi %s2965_s27, %s3346_s27  }
   0xe   : > { %3326 = sst [smem:[#allocation19_spill]] %s2891_s29  ;;  %p2510_p0 = scmp.ge.s32.totalorder %s2903_s10, 1 }
   0xf   : > { %3327 = sst [smem:[#allocation20_spill]] %s2899_s9  ;;  %p63_p1 = scmp.eq.s32.totalorder %s2996_s11, 0 }
  0x10   : > { %p253_p2 = scmp.lt.s32.totalorder %s2903_s10, 3  ;;  %s3328_s2 = sld [smem:[#allocation24_spill]] }
  0x11   : > { %s2905_s16 = smov [#allocation8]   ;;  %p2514_p6 = scmp.ge.s32.totalorder %s2903_s10, 2 }
  0x12   : > { %p3004_p3 = pnand %p2510_p0, %p253_p2  ;;  %s266_s17 = sshll.u32 %s2905_s16, 4  ;;  %s267_s17 = int_to_ptr.vmem [resolvable:$true] %s266_s17 }
  0x13   : > { %s3331_s4 = sld [smem:[#allocation25_spill]]  ;;  %s2906_s22 = smov 128  }
  0x14   : > { %p2548_p4 = pneg %p3004_p3  ;;  %s2907_s23 = smov 8  }
  0x15   : > { %s2908_s24 = smov [#allocation9]   ;;  %s3332_s6 = sld [smem:[#allocation26_spill]] }
  0x16   : > { %s264_s14 = sshll.u32 %s3328_s2, 4  ;;  %p3012_p5 = pnand %p2548_p4, %p63_p1  ;;  %s265_s14 = int_to_ptr.hbm [resolvable:$true] %s264_s14 }
  0x17   : > { %s283_s25 = sshll.u32 %s2908_s24, 4  ;;  %s2909_s16 = smov [#allocation11]   ;;  %s284_s25 = int_to_ptr.vmem [resolvable:$true] %s283_s25 }
  0x18   : > { %2551 = dma.hbm_to_vmem [thread:$0]  (!%p3012_p5), %s265_s14, 512, %s267_s17, [#allocation7], %s2906_s22, %s2906_s22, %s2907_s23  }
  0x19   : > { %s281_s21 = sshll.u32 %s3331_s4, 4  ;;  %s300_s19 = sshll.u32 %s2909_s16, 4  ;;  %s282_s21 = int_to_ptr.hbm [resolvable:$true] %s281_s21  ;;  %s301_s19 = int_to_ptr.vmem [resolvable:$true] %s300_s19 }
  0x1a   : > { %2554 = dma.hbm_to_vmem [thread:$0]  (!%p3012_p5), %s282_s21, 512, %s284_s25, [#allocation10], %s2906_s22, %s2906_s22, %s2907_s23  }
  0x1b   : > { %s298_s13 = sshll.u32 %s3332_s6, 4  ;;  %s2509_s14 = sadd.s32 4294967294, %s2903_s10   ;;  %s299_s13 = int_to_ptr.hbm [resolvable:$true] %s298_s13 }
  0x1c   : > { %2557 = dma.hbm_to_vmem [thread:$0]  (!%p3012_p5), %s299_s13, 512, %s301_s19, [#allocation10], %s2906_s22, %s2906_s22, %s2907_s23  }
  0x1d   : > { %s40_s17 = sadd.s32 1, %s2899_s9  ;;  %s49_s20 = sadd.s32 1, %s2891_s29 }
  0x1e   : > { %p42_p7 = scmp.ge.s32.totalorder %s40_s17, 2  ;;  %p56_p8 = scmp.ne.s32.totalorder %s2891_s29, %s2887_s28 }
  0x1f   : > { %p57_p9 = scmp.eq.s32.totalorder %s2903_s10, 0  ;;  %p62_p10 = scmp.ne.s32.totalorder %s2887_s28, %s2883_s27 }
  0x20   : > { %s3349_s17 = smov (%p42_p7, %s40_s17), 0  ;;  %p240_p13 = scmp.eq.s32.totalorder %s2996_s11, 1 }
  0x21   : > { %3333 = sst [smem:[#allocation21_spill]] %s3349_s17  ;;  %p3039_p11 = por %p57_p9, %p56_p8 }
  0x22   : > { %p3045_p12 = por %p63_p1, %p62_p10  ;;  %s44_s22 = ssub.s32 %s2899_s9, %s3349_s17 }
  0x23   : > { %p47_p0 = scmp.eq.s32.totalorder %s44_s22, 0  ;;  %p246_p2 = scmp.eq.s32.totalorder %s2509_s14, 1 }
  0x24   : > { %p3052_p4 = por %p240_p13, %p56_p8  ;;  %p2572_p5 = scmp.lt.s32.totalorder %s2903_s10, 2 }
  0x25   : > { %s3058_s24 = scalar_select %p47_p0, %s2891_s29, %s49_s20  }
  0x26   : > { %p3060_p7 = por %p246_p2, %p62_p10  ;;  %s317_s26 = sand.u32 1, %s2891_s29  }
  0x27   : > { %3337 = sst [smem:[#allocation22_spill]] %s3058_s24  ;;  %s2515_s12 = sshll.u32 %s317_s26, 3 }
  0x28   : > { %s3338_s25 = scalar_select %p3060_p7, 1, 0 }
  0x29   : > { %s2516_s13 = sshll.u32 %s2899_s9, 3  ;;  %s321_s14 = scalar_lea.vmem [#allocation3], %s2515_s12 }
  0x2a   : > { %3339 = sst [smem:[#allocation23_spill]] %s3338_s25  ;;  %s326_s22 = scalar_lea.hbm %s3308_s0, %s2516_s13 }
  0x2b   : > { %s330_s2 = sshll.u32 %s321_s14, 4  ;;  %s328_s4 = sshll.u32 %s326_s22, 4  ;;  %s331_s2 = int_to_ptr.vmem [resolvable:$true] %s330_s2  ;;  %s329_s4 = int_to_ptr.hbm [resolvable:$true] %s328_s4 }
  0x2c   : > { %p2559_p8 = pnand %p2572_p5, %p3039_p11  ;;  %s345_s17 = scalar_lea.hbm %s3309_s1, %s2516_s13 }
  0x2d   : > { %s337_s24 = sand.u32 1, %s2903_s10   ;;  %s318_s25 = scalar_lea.sflag [#allocation4], %s317_s26 }
  0x2e   : > { %2561 = dma.hbm_to_vmem [thread:$0]  (!%p2559_p8), %s329_s4, 128, %s331_s2, %s318_s25  }
  0x2f   : > { %s347_s29 = sshll.u32 %s345_s17, 4  ;;  %s341_s9 = scalar_lea.vmem [#allocation6], %s2515_s12  ;;  %s348_s29 = int_to_ptr.hbm [resolvable:$true] %s347_s29 }
  0x30   : > { %s349_s27 = sshll.u32 %s341_s9, 4  ;;  %s338_s16 = scalar_lea.sflag [#allocation7], %s337_s24  ;;  %s350_s27 = int_to_ptr.vmem [resolvable:$true] %s349_s27 }
  0x31   : > { %2564 = dma.hbm_to_vmem [thread:$0]  (!%p2559_p8), %s348_s29, 128, %s350_s27, %s338_s16  }
  0x32   : > { %358 = sbr.rel (%p3004_p3) target bundleno = 2368 (0x940), region = 52  ;;  %s3078_s21 = sand.u32 (!%p3004_p3), 1, %s2887_s28  }
  0x33   : > { %s3081_s6 = sshll.u32 (!%p3004_p3), %s3078_s21, 3  ;;  %s361_s2 = scalar_lea.sflag (!%p3004_p3), [#allocation4], %s3078_s21 }
  0x34   : > { %s364_s4 = scalar_lea.vmem (!%p3004_p3), [#allocation3], %s3081_s6 }
  0x37   : > { %2862 = dma.done.wait (%p3045_p12), %s361_s2, 128  }
  0x38   : > { %2864 = vsyncadd (%p3045_p12), %s361_s2, 4294967168  ;;  %s370_s27 = sand.u32 1, %s2996_s11   ;;  %s374_s9 = scalar_lea.vmem [#allocation6], %s3081_s6 }
  0x39   : > { %s371_s29 = scalar_lea.sflag [#allocation7], %s370_s27 }
  0x3a   : > { %2866 = dma.done.wait (%p3045_p12), %s371_s29, 128  }
  0x3b   : > { %2868 = vsyncadd (%p3045_p12), %s371_s29, 4294967168 }
  0x3c   : > { %2870 = dma.done.wait (%p63_p1), [#allocation7], 512  }
  0x3d   : > { %2872 = vsyncadd (%p63_p1), [#allocation7], 4294966784 }
  0x3e   : > { %2874 = dma.done.wait (%p63_p1), [#allocation10], 1024  }
  0x3f   : > { %2876 = vsyncadd (%p63_p1), [#allocation10], 4294966272  ;;  %vm438_vm0 = vcmask 261120   ;;  %v433_v0 = vld [vmem:[#allocation8 + $0x18] sm:$0xff]  ;;  %v432_v1 = vld [vmem:[#allocation8 + $0x10] sm:$0xff]  ;;  %vm824_vm1 = vcmask 64512  }
  0x40   : > { %v431_v2 = vld [vmem:[#allocation8 + $0x8] sm:$0xff]  ;;  %v3103_v3 = vand.u32 4294901760, %v433_v0  ;;  %v3105_v4 = vand.u32 4294901760, %v432_v1  ;;  %v430_v6 = vld [vmem:[#allocation8] sm:$0xff]  ;;  %v631_v8 = vld [vmem:[#allocation9 + $0x18] sm:$0xff]  ;;  %s2910_s24 = smov 120  }
  0x41   : > { %v3107_v5 = vand.u32 4294901760, %v431_v2  ;;  %v428_v7 = vld [vmem:[%s364_s4] sm:$0xff]  ;;  %v3109_v9 = vand.u32 4294901760, %v430_v6  ;;  %v3112_v11 = vand.u32 4294901760, %v631_v8  ;;  %v630_v12 = vld [vmem:[#allocation9 + $0x10] sm:$0xff]  ;;  %s2911_s25 = smov 96  }
  0x42   : > { %v440_v10 = vsel %vm438_vm0, %v428_v7, 0  ;;  %v629_v13 = vld [vmem:[#allocation9 + $0x8] sm:$0xff]  ;;  %v484_v14 = vsub.f32 %v433_v0, %v3103_v3  ;;  %455 = vmatpush.msra.mxu0 %v3103_v3  ;;  %v3117_v15 = vsub.f32 %v432_v1, %v3105_v4  ;;  %555 = vmatpush.msra.mxu3 %v3103_v3  ;;  %v628_v18 = vld [vmem:[#allocation9] sm:$0xff]  ;;  %v3128_v20 = vand.u32 4294901760, %v630_v12  ;;  %v429_v38 = vld [vmem:[%s374_s9] sm:$0xff]  ;;  %s2912_s26 = smov 88  }
  0x43   : > { %v3121_v16 = vsub.f32 %v431_v2, %v3107_v5  ;;  %v3123_v17 = vand.u32 4294901760, %v440_v10  ;;  %v3126_v19 = vsub.f32 %v430_v6, %v3109_v9  ;;  %v3131_v21 = vsub.f32 %v631_v8, %v3112_v11  ;;  %v2640_v62 = vld [vmem:[%s3311_s3] ss:$0 sm:$0xff]  ;;  %s2913_s12 = smov 112   ;;  %s2914_s13 = smov 80  }
  0x44   : > { %v3133_v22 = vand.u32 4294901760, %v629_v13  ;;  %526 = vmatpush.msra.mxu2 %v484_v14  ;;  %457 = vmatpush.msra.mxu0 %v3105_v4  ;;  %v485_v23 = vand.u32 4294901760, %v484_v14  ;;  %v491_v24 = vand.u32 4294901760, %v3117_v15  ;;  %v3143_v29 = vsub.f32 %v630_v12, %v3128_v20  ;;  %s2915_s19 = smov 104   ;;  %s2916_s22 = smov 8  }
  0x45   : > { %v463_v25 = vsub.f32 %v440_v10, %v3123_v17  ;;  %v497_v26 = vand.u32 4294901760, %v3121_v16  ;;  %557 = vmatpush.msra.mxu3 %v3105_v4  ;;  %v503_v27 = vand.u32 4294901760, %v3126_v19  ;;  %v682_v28 = vand.u32 4294901760, %v3131_v21  ;;  %s2917_s14 = smov 16   ;;  %s2918_s20 = smov 72  }
  0x46   : > { %v3145_v30 = vand.u32 4294901760, %v628_v18  ;;  %529 = vmatpush.msra.mxu2 %v3117_v15  ;;  %v486_v31 = vsub.f32 %v484_v14, %v485_v23  ;;  %459 = vmatpush.msra.mxu0 %v3107_v5  ;;  %v492_v32 = vsub.f32 %v3117_v15, %v491_v24  ;;  %v688_v36 = vand.u32 4294901760, %v3143_v29  ;;  %s2919_s16 = smov 24   ;;  %s2527_s27 = sshll.u32 %s2895_s30, 3 }
  0x47   : > { %v498_v33 = vsub.f32 %v3121_v16, %v497_v26  ;;  %v464_v34 = vand.u32 4294901760, %v463_v25  ;;  %559 = vmatpush.msra.mxu3 %v3107_v5  ;;  %v683_v35 = vsub.f32 %v3131_v21, %v682_v28  ;;  %v3155_v37 = vsub.f32 %v629_v13, %v3133_v22  ;;  %s2372_s11 = scalar_lea.hbm %s3316_s8, %s2527_s27  ;;  %s427_s15 = scalar_lea.vmem [#allocation12], %s3081_s6 }
  0x48   : > { %v487_v39 = vand.u32 4294901760, %v486_v31  ;;  %532 = vmatpush.msra.mxu2 %v3121_v16  ;;  %v493_v40 = vand.u32 4294901760, %v492_v32  ;;  %461 = vmatpush.msra.mxu0 %v3109_v9  ;;  %v504_v42 = vsub.f32 %v3126_v19, %v503_v27  ;;  %v689_v44 = vsub.f32 %v3143_v29, %v688_v36  ;;  %s2374_s17 = sshll.u32 %s427_s15, 4  ;;  %s2376_s18 = sshll.u32 %s2372_s11, 4  ;;  %s2375_s17 = int_to_ptr.vmem [resolvable:$true] %s2374_s17  ;;  %s2377_s18 = int_to_ptr.hbm [resolvable:$true] %s2376_s18 }
  0x49   : > { %v465_v41 = vsub.f32 %v463_v25, %v464_v34  ;;  %561 = vmatpush.msra.mxu3 %v3109_v9  ;;  %v684_v43 = vand.u32 4294901760, %v683_v35  ;;  %v694_v45 = vand.u32 4294901760, %v3155_v37  ;;  %v499_v46 = vand.u32 4294901760, %v498_v33  ;;  %s2361_s30 = scalar_lea.sflag [#allocation5], %s3078_s21  ;;  %s2829_s6 = scalar_lea.hbm %s3316_s8, 16 }
  0x4a   : > { %584 = vmatpush.msrb.mxu0 %v485_v23  ;;  %488 = vmatpush.msra.mxu1 %v487_v39  ;;  %v637_v48 = vsel %vm438_vm0, %v429_v38, 0  ;;  %v699_v49 = vsub.f32 %v628_v18, %v3145_v30  ;;  %v690_v50 = vand.u32 4294901760, %v689_v44  ;;  %v505_v53 = vand.u32 4294901760, %v504_v42 }
  0x4b   : > { %535 = vmatpush.msra.mxu2 %v3126_v19  ;;  %v466_v47 = vand.u32 4294901760, %v465_v41  ;;  %565 = vmatmul.f32.vlgmr.msra.gmra.mxu3 %v464_v34  ;;  %v695_v51 = vsub.f32 %v3155_v37, %v694_v45  ;;  %v659_v52 = vand.u32 4294901760, %v637_v48  ;;  %vm1488_vm10 = vcmask 130112  }
  0x4c   : > { %538 = vmatmul.f32.vlgmr.msra.gmra.mxu2 %v463_v25  ;;  %494 = vmatpush.msra.mxu1 %v493_v40  ;;  %v700_v54 = vand.u32 4294901760, %v699_v49  ;;  %vm1824_vm15 = vcmask 195712  }
  0x4d   : > { %652 = vmatpush.msrb.mxu2 %v3112_v11  ;;  %467 = vmatmul.f32.vlgmr.msra.gmra.mxu0 %v466_v47  ;;  %v660_v55 = vsub.f32 %v637_v48, %v659_v52  ;;  %v696_v57 = vand.u32 4294901760, %v695_v51 }
  0x4e   : > { %685 = vmatpush.msrb.mxu3 %v684_v43  ;;  %500 = vmatpush.msra.mxu1 %v499_v46  ;;  %v701_v56 = vsub.f32 %v699_v49, %v700_v54 }
  0x4f   : > { %654 = vmatpush.msrb.mxu2 %v3128_v20  ;;  %588 = vmatpush.msrb.mxu0 %v491_v24  ;;  %v661_v58 = vand.u32 4294901760, %v660_v55 }
  0x50   : > { %691 = vmatpush.msrb.mxu3 %v690_v50  ;;  %506 = vmatpush.msra.mxu1 %v505_v53  ;;  %v702_v60 = vand.u32 4294901760, %v701_v56 }
  0x51   : > { %656 = vmatpush.msrb.mxu2 %v3133_v22  ;;  %508 = vmatmul.f32.vlgmr.msra.gmra.mxu1 %v3123_v17  ;;  %v662_v59 = vsub.f32 %v660_v55, %v661_v58 }
  0x52   : > { %592 = vmatpush.msrb.mxu0 %v497_v26  ;;  %615 = vmatpush.msrb.mxu1 %v3103_v3 }
  0x53   : > { %658 = vmatpush.msrb.mxu2 %v3145_v30  ;;  %697 = vmatpush.msrb.mxu3 %v696_v57  ;;  %v663_v61 = vand.u32 4294901760, %v662_v59 }
  0x54   : > { %596 = vmatpush.msrb.mxu0 %v503_v27  ;;  %617 = vmatpush.msrb.mxu1 %v3105_v4 }
  0x55   : > { %781 = vmatpush.msra.mxu2 %v682_v28  ;;  %703 = vmatpush.msrb.mxu3 %v702_v60 }
  0x56   : > { %664 = vmatmul.f32.vlgmr.msrb.gmra.mxu2 %v663_v61  ;;  %619 = vmatpush.msrb.mxu1 %v3107_v5 }
  0x57   : > { %598 = vmatmul.f32.vlgmr.msrb.gmra.mxu0 %v3123_v17  ;;  %705 = vmatmul.f32.vlgmr.msrb.gmra.mxu3 %v659_v52 }
  0x58   : > { %723 = vmatpush.msra.mxu0 %v3131_v21  ;;  %621 = vmatpush.msrb.mxu1 %v3109_v9  ;;  %v2641_v9 = vld [vmem:[%s3313_s5] ss:$0 sm:$0xff] }
  0x59   : > { %785 = vmatpush.msra.mxu2 %v688_v36  ;;  %812 = vmatpush.msra.mxu3 %v3112_v11 }
  0x5a   : > { %623 = vmatmul.f32.vlgmr.msrb.gmra.mxu1 %v3123_v17  ;;  %726 = vmatpush.msra.mxu0 %v3143_v29 }
  0x5b   : > { %752 = vmatpush.msra.mxu1 %v3112_v11  ;;  %789 = vmatpush.msra.mxu2 %v694_v45 }
  0x5c   : > { %814 = vmatpush.msra.mxu3 %v3128_v20  ;;  %729 = vmatpush.msra.mxu0 %v3155_v37 }
  0x5d   : > { %754 = vmatpush.msra.mxu1 %v3128_v20  ;;  %793 = vmatpush.msra.mxu2 %v700_v54 }
  0x5e   : > { %816 = vmatpush.msra.mxu3 %v3133_v22  ;;  %795 = vmatmul.f32.vlgmr.msra.gmra.mxu2 %v659_v52 }
  0x5f   : > { %732 = vmatpush.msra.mxu0 %v699_v49  ;;  %756 = vmatpush.msra.mxu1 %v3133_v22 }
  0x60   : > { %818 = vmatpush.msra.mxu3 %v3145_v30  ;;  %735 = vmatmul.f32.vlgmr.msra.gmra.mxu0 %v660_v55 }
  0x61   : > { %820 = vmatmul.f32.vlgmr.msra.gmra.mxu3 %v659_v52  ;;  %758 = vmatpush.msra.mxu1 %v3145_v30 }
  0x62   : > { %762 = vmatmul.f32.vlgmr.msra.gmra.mxu1 %v661_v58 }
  0xca   : > { %v468_v63 = vpop.f32.mrf.mxu0 }
  0xcb   : > { %v469_v0 = vadd.f32 %v2640_v62, %v468_v63 }
  0xce   : > { %v509_v1 = vpop.f32.mrf.mxu1  ;;  %v566_v4 = vpop.f32.mrf.mxu3 }
  0xcf   : > { %v539_v2 = vpop.f32.mrf.mxu2  ;;  %v510_v3 = vadd.f32 %v509_v1, %v469_v0 }
  0xd1   : > { %v540_v5 = vadd.f32 %v539_v2, %v510_v3 }
  0xd3   : > { %v567_v6 = vadd.f32 %v566_v4, %v540_v5 }
  0xd4   : > { %v599_v7 = vpop.f32.mrf.mxu0 }
  0xd5   : > { %v600_v8 = vadd.f32 %v599_v7, %v567_v6 }
  0xd7   : > { %v624_v10 = vpop.f32.mrf.mxu1 }
  0xd8   : > { %v625_v11 = vadd.f32 %v624_v10, %v600_v8 }
  0xd9   : > { %v665_v12 = vpop.f32.mrf.mxu2 }
  0xda   : > { %v3197_v13 = vmul.f32 0.35355338, %v625_v11  ;;  %v666_v14 = vadd.f32 %v2641_v9, %v665_v12  ;;  %v706_v15 = vpop.f32.mrf.mxu3 }
  0xdc   : > { %v826_v16 = vsel %vm824_vm1, %v3197_v13, 0  ;;  %v707_v17 = vadd.f32 %v706_v15, %v666_v14  ;;  %1154 = vrot.lane.b32.xlu2 %v3197_v13, %s2910_s24 }
  0xdd   : > { %v848_v18 = vand.u32 4294901760, %v826_v16  ;;  %v736_v19 = vpop.f32.mrf.mxu0 }
  0xde   : > { %v737_v21 = vadd.f32 %v736_v19, %v707_v17 }
  0xdf   : > { %v849_v20 = vsub.f32 %v826_v16, %v848_v18  ;;  %v763_v22 = vpop.f32.mrf.mxu1 }
  0xe0   : > { %v764_v23 = vadd.f32 %v763_v22, %v737_v21 }
  0xe1   : > { %v796_v24 = vpop.f32.mrf.mxu2  ;;  %v850_v26 = vand.u32 4294901760, %v849_v20 }
  0xe2   : > { %v797_v25 = vadd.f32 %v796_v24, %v764_v23 }
  0xe3   : > { %v851_v30 = vsub.f32 %v849_v20, %v850_v26 }
  0xe4   : > { %v821_v27 = vpop.f32.mrf.mxu3 }
  0xe5   : > { %v3202_v28 = vadd.f32 %v821_v27, %v797_v25  ;;  %v852_v33 = vand.u32 4294901760, %v851_v30 }
  0xe7   : > { %1001 = vrot.lane.b32.xlu1 %v3202_v28, %s2911_s25  ;;  %v829_v29 = vsel %vm824_vm1, %v3202_v28, 0 }
  0xe8   : > { %v846_v31 = vand.u32 4294901760, %v829_v29 }
  0xea   : > { %847 = vmatpush.xpose.msrb.mxu0 %v846_v31  ;;  %923 = vmatpush.xpose.msrb.mxu3 %v846_v31  ;;  %v873_v32 = vsub.f32 %v829_v29, %v846_v31 }
  0xec   : > { %900 = vmatpush.xpose.msrb.mxu2 %v873_v32  ;;  %v874_v34 = vand.u32 4294901760, %v873_v32 }
  0xed   : > { %853 = vmatmul.f32.vlgmr.msrb.gmra.mxu0 %v852_v33  ;;  %927 = vmatmul.f32.vlgmr.msrb.gmra.mxu3 %v850_v26 }
  0xee   : > { %949 = vmatpush.xpose.msra.mxu0 %v874_v34  ;;  %v875_v35 = vsub.f32 %v873_v32, %v874_v34 }
  0xef   : > { %1156 = vrot.lane.b32.xlu1 %v3202_v28, %s2910_s24  ;;  %903 = vmatmul.f32.vlgmr.msrb.gmra.mxu2 %v849_v20  ;;  %s2823_s24 = sshra.s32 %s2377_s18, 4  ;;  %s2824_s24 = int_to_ptr.hbm [resolvable:$true] %s2823_s24 }
  0xf0   : > { %v876_v36 = vand.u32 4294901760, %v875_v35  ;;  %s2825_s25 = scalar_lea.hbm %s2824_s24, 8  ;;  %p2830_p10 = scmp.lt.s32.totalorder %s2824_s24, %s3316_s8 }
  0xf1   : > { %p2826_p1 = scmp.ne.s32.totalorder %s2824_s24, %s2825_s25  ;;  %p2831_p11 = scmp.lt.s32.totalorder %s2829_s6, %s2825_s25 }
  0xf2   : > { %877 = vmatpush.xpose.msrb.mxu1 %v876_v36 }
  0xf3   : > { %p2827_p3 = pnand %p2826_p1, %p3052_p4  ;;  %p2832_p12 = por %p2831_p11, %p2830_p10 }
  0xf5   : > { %879 = vmatmul.f32.vlgmr.msrb.gmra.mxu1 %v848_v18  ;;  %951 = vmatmul.f32.vlgmr.msra.gmra.mxu0 %v848_v18  ;;  %p2828_p9 = pneg %p2827_p3 }
  0xf6   : > { %971 = vmatpush.xpose.msra.mxu1 %v846_v31 }
  0xf7   : > { %1332 = vrot.lane.b32.xlu1 %v3202_v28, %s2912_s26  ;;  %p2833_p13 = pnand %p2832_p12, %p2828_p9 }
  0xfd   : > { %973 = vmatmul.f32.vlgmr.msra.gmra.mxu1 %v848_v18 }
  0xff   : > { %1490 = vrot.lane.b32.xlu1 %v3197_v13, %s2913_s12 }
 0x136   : > { %v1155_v6 = vpop.permute.xlu2 %1154 }
 0x137   : > { %v1158_v10 = vsel %vm824_vm1, %v1155_v6, 0 }
 0x138   : > { %v1179_v16 = vand.u32 4294901760, %v1158_v10 }
 0x13a   : > { %v1180_v22 = vsub.f32 %v1158_v10, %v1179_v16 }
 0x13c   : > { %v1181_v26 = vand.u32 4294901760, %v1180_v22 }
 0x13e   : > { %v1182_v31 = vsub.f32 %v1180_v22, %v1181_v26 }
 0x140   : > { %v1183_v35 = vand.u32 4294901760, %v1182_v31 }
 0x159   : > { %v1002_v37 = vpop.permute.xlu1 %1001 }
 0x15a   : > { %v1022_v38 = vand.u32 4294901760, %v1002_v37 }
 0x15c   : > { %v1049_v39 = vsub.f32 %v1002_v37, %v1022_v38  ;;  %1023 = vmatpush.msra.mxu2 %v1022_v38  ;;  %1099 = vmatpush.msrb.mxu1 %v1022_v38 }
 0x15e   : > { %v1050_v40 = vand.u32 4294901760, %v1049_v39  ;;  %1076 = vmatpush.msrb.mxu0 %v1049_v39 }
 0x160   : > { %v1051_v41 = vsub.f32 %v1049_v39, %v1050_v40  ;;  %1125 = vmatpush.msrb.mxu2 %v1050_v40 }
 0x161   : > { %v1157_v42 = vpop.permute.xlu1 %1156 }
 0x162   : > { %v1052_v43 = vand.u32 4294901760, %v1051_v41  ;;  %v1160_v44 = vsel %vm824_vm1, %v1157_v42, 0 }
 0x163   : > { %v3212_v45 = vand.u32 4294901760, %v1160_v44 }
 0x164   : > { %1053 = vmatpush.msra.mxu3 %v1052_v43 }
 0x165   : > { %v3215_v46 = vsub.f32 %v1160_v44, %v3212_v45  ;;  %1178 = vmatpush.xpose.msra.mxu0 %v3212_v45 }
 0x166   : > { %1147 = vmatpush.msrb.mxu3 %v1022_v38 }
 0x167   : > { %v1205_v47 = vand.u32 4294901760, %v3215_v46 }
 0x169   : > { %v1206_v48 = vsub.f32 %v3215_v46, %v1205_v47  ;;  %v1333_v8 = vpop.permute.xlu1 %1332 }
 0x16a   : > { %v854_v50 = vpop.f32.mrf.mxu0  ;;  %v1353_v14 = vand.u32 4294901760, %v1333_v8 }
 0x16b   : > { %v1207_v49 = vand.u32 4294901760, %v1206_v48 }
 0x16c   : > { %v1380_v20 = vsub.f32 %v1333_v8, %v1353_v14 }
 0x16d   : > { %1208 = vmatpush.xpose.msra.mxu1 %v1207_v49 }
 0x16e   : > { %v1381_v25 = vand.u32 4294901760, %v1380_v20 }
 0x170   : > { %v928_v55 = vpop.f32.mrf.mxu3  ;;  %v1382_v30 = vsub.f32 %v1380_v20, %v1381_v25 }
 0x172   : > { %v880_v51 = vpop.f32.mrf.mxu1  ;;  %v904_v53 = vpop.f32.mrf.mxu2  ;;  %v1383_v34 = vand.u32 4294901760, %v1382_v30 }
 0x173   : > { %v881_v52 = vadd.f32 %v880_v51, %v854_v50  ;;  %v952_v57 = vpop.f32.mrf.mxu0 }
 0x175   : > { %v905_v54 = vadd.f32 %v904_v53, %v881_v52 }
 0x177   : > { %v929_v56 = vadd.f32 %v928_v55, %v905_v54 }
 0x179   : > { %v953_v58 = vadd.f32 %v952_v57, %v929_v56 }
 0x17a   : > { %v974_v59 = vpop.f32.mrf.mxu1 }
 0x17b   : > { %v975_v60 = vadd.f32 %v974_v59, %v953_v58 }
 0x17d   : > { %v977_v61 = vsel %vm824_vm1, %v975_v60, -inf }
 0x17e   : > { %978 = vmax.xlane.f32.xlu0 %v977_v61 }
 0x1f1   : > { %v979_v62 = vpop.xlane.xlu0 %978 }
 0x1f2   : > { %v980_v63 = vsub.f32 %v975_v60, %v979_v62 }
 0x1f4   : > { %v981_v0 = vmul.f32 1.442695, %v980_v63 }
 0x1f6   : > { %2643 = vpow2.f32 %v981_v0 }
 0x1fc   : > { %v2644_v1 = vpop.eup %2643 }
 0x1fd   : > { %v983_v2 = vsel %vm824_vm1, %v2644_v1, 0.0 }
 0x1fe   : > { %984 = vadd.xlane.f32.xlu0 %v983_v2 }
 0x271   : > { %v985_v3 = vpop.xlane.xlu0 %984 }
 0x272   : > { %2645 = vrcp.f32 %v985_v3  ;;  %v997_v9 = vand.u32 2147483648, %v985_v3  ;;  %v995_v12 = vand.u32 2147483647, %v985_v3  ;;  %vm991_vm3 = vweird.f32 %v985_v3 }
 0x274   : > { %v998_v17 = vor.u32 1.1754944e-38, %v997_v9  ;;  %vm996_vm5 = vcmp.eq.f32.partialorder %v995_v12, 8.507059e+37 }
 0x278   : > { %v2646_v4 = vpop.eup %2645 }
 0x279   : > { %v987_v5 = vmul.f32 %v2646_v4, %v985_v3  ;;  %vm992_vm2 = vweird.f32 %v2646_v4  ;;  %v1491_v3 = vpop.permute.xlu1 %1490 }
 0x27a   : > { %vm993_vm4 = vmor %vm991_vm3, %vm992_vm2  ;;  %v1494_v9 = vsel %vm824_vm1, %v1491_v3, 0 }
 0x27b   : > { %v988_v7 = vsub.f32 1.0, %v987_v5 }
 0x27d   : > { %v989_v11 = vmul.f32 %v2646_v4, %v988_v7 }
 0x27f   : > { %v990_v15 = vadd.f32 %v2646_v4, %v989_v11 }
 0x281   : > { %v994_v18 = vsel %vm993_vm4, %v2646_v4, %v990_v15 }
 0x282   : > { %v999_v19 = vsel %vm996_vm5, %v998_v17, %v994_v18 }
 0x283   : > { %v1000_v21 = vmul.f32 %v2644_v1, %v999_v19 }
 0x285   : > { %v1005_v23 = vsel %vm824_vm1, %v1000_v21, 0 }
 0x286   : > { %v1024_v24 = vand.u32 4294901760, %v1005_v23 }
 0x288   : > { %1055 = vmatmul.f32.vlgmr.msra.gmra.mxu3 %v1024_v24  ;;  %v1025_v27 = vsub.f32 %v1005_v23, %v1024_v24 }
 0x289   : > { %1254 = vmatpush.xpose.msra.mxu3 %v3212_v45 }
 0x28a   : > { %1079 = vmatmul.f32.vlgmr.msrb.gmra.mxu0 %v1025_v27  ;;  %v1026_v29 = vand.u32 4294901760, %v1025_v27 }
 0x28b   : > { %1280 = vmatpush.xpose.msrb.mxu0 %v1205_v47 }
 0x28c   : > { %1103 = vmatmul.f32.vlgmr.msrb.gmra.mxu1 %v1026_v29  ;;  %v1027_v32 = vsub.f32 %v1025_v27, %v1026_v29 }
 0x28d   : > { %1302 = vmatpush.xpose.msrb.mxu1 %v3212_v45 }
 0x28e   : > { %v1028_v33 = vand.u32 4294901760, %v1027_v32 }
 0x290   : > { %1029 = vmatmul.f32.vlgmr.msra.gmra.mxu2 %v1028_v33  ;;  %1149 = vmatmul.f32.vlgmr.msrb.gmra.mxu3 %v1024_v24 }
 0x291   : > { %1231 = vmatpush.xpose.msra.mxu2 %v3215_v46  ;;  %1384 = vmatpush.msrb.mxu3 %v1383_v34 }
 0x292   : > { %1184 = vmatmul.f32.vlgmr.msra.gmra.mxu0 %v1183_v35 }
 0x293   : > { %1407 = vmatpush.msra.mxu0 %v1380_v20 }
 0x294   : > { %1210 = vmatmul.f32.vlgmr.msra.gmra.mxu1 %v1179_v16 }
 0x295   : > { %1430 = vmatpush.msra.mxu1 %v1353_v14 }
 0x298   : > { %1127 = vmatmul.f32.vlgmr.msrb.gmra.mxu2 %v1024_v24  ;;  %1258 = vmatmul.f32.vlgmr.msra.gmra.mxu3 %v1181_v26 }
 0x299   : > { %1354 = vmatpush.msrb.mxu2 %v1353_v14  ;;  %1478 = vmatpush.msra.mxu3 %v1353_v14  ;;  %v1515_v14 = vand.u32 4294901760, %v1494_v9 }
 0x29a   : > { %1282 = vmatmul.f32.vlgmr.msrb.gmra.mxu0 %v1179_v16 }
 0x29b   : > { %v1516_v20 = vsub.f32 %v1494_v9, %v1515_v14 }
 0x29c   : > { %1304 = vmatmul.f32.vlgmr.msrb.gmra.mxu1 %v1179_v16 }
 0x29d   : > { %v1517_v31 = vand.u32 4294901760, %v1516_v20 }
 0x2a0   : > { %1234 = vmatmul.f32.vlgmr.msra.gmra.mxu2 %v1180_v22 }
 0x2a1   : > { %1456 = vmatpush.msra.mxu2 %v1381_v25 }
 0x307   : > { %v1080_v37 = vpop.f32.mrf.mxu0 }
 0x309   : > { %v1104_v40 = vpop.f32.mrf.mxu1 }
 0x30b   : > { %v1056_v36 = vpop.f32.mrf.mxu3 }
 0x30f   : > { %v1185_v46 = vpop.f32.mrf.mxu0 }
 0x311   : > { %v1211_v48 = vpop.f32.mrf.mxu1 }
 0x312   : > { %v1212_v49 = vadd.f32 %v1211_v48, %v1185_v46 }
 0x313   : > { %v1030_v38 = vpop.f32.mrf.mxu2  ;;  %v1150_v43 = vpop.f32.mrf.mxu3 }
 0x314   : > { %v1057_v39 = vadd.f32 %v1056_v36, %v1030_v38  ;;  %v1518_v38 = vsub.f32 %v1516_v20, %v1517_v31 }
 0x316   : > { %v1081_v41 = vadd.f32 %v1080_v37, %v1057_v39 }
 0x317   : > { %v1283_v54 = vpop.f32.mrf.mxu0 }
 0x318   : > { %v1105_v42 = vadd.f32 %v1104_v40, %v1081_v41 }
 0x319   : > { %v1305_v56 = vpop.f32.mrf.mxu1 }
 0x31b   : > { %v1128_v44 = vpop.f32.mrf.mxu2  ;;  %v1259_v52 = vpop.f32.mrf.mxu3 }
 0x31c   : > { %v1129_v45 = vadd.f32 %v1128_v44, %v1105_v42 }
 0x31e   : > { %v1151_v47 = vadd.f32 %v1150_v43, %v1129_v45  ;;  %v1519_v43 = vand.u32 4294901760, %v1518_v38 }
 0x320   : > { %1153 = vst.msk [vmem:[#allocation2] sm:$0xff] %vm824_vm1, %v1151_v47 }
 0x323   : > { %v1235_v50 = vpop.f32.mrf.mxu2 }
 0x324   : > { %v1236_v51 = vadd.f32 %v1235_v50, %v1212_v49 }
 0x326   : > { %v1260_v53 = vadd.f32 %v1259_v52, %v1236_v51 }
 0x328   : > { %v1284_v55 = vadd.f32 %v1283_v54, %v1260_v53 }
 0x32a   : > { %v1306_v57 = vadd.f32 %v1305_v56, %v1284_v55 }
 0x32c   : > { %v1308_v58 = vsel %vm824_vm1, %v1306_v57, -inf }
 0x32d   : > { %1309 = vmax.xlane.f32.xlu2 %v1308_v58 }
 0x345   : > { %1668 = vrot.lane.b32.xlu2 %v3202_v28, %s2914_s13 }
 0x34d   : > { %1828 = vrot.lane.b32.xlu2 %v3202_v28, %s2915_s19 }
 0x3a0   : > { %v1310_v59 = vpop.xlane.xlu2 %1309 }
 0x3a1   : > { %v1311_v60 = vsub.f32 %v1306_v57, %v1310_v59 }
 0x3a3   : > { %v1312_v61 = vmul.f32 1.442695, %v1311_v60 }
 0x3a5   : > { %2647 = vpow2.f32 %v1312_v61 }
 0x3a8   : > { %v1669_v4 = vpop.permute.xlu2 %1668 }
 0x3a9   : > { %v1689_v11 = vand.u32 4294901760, %v1669_v4 }
 0x3ab   : > { %v2648_v62 = vpop.eup %2647  ;;  %v1716_v18 = vsub.f32 %v1669_v4, %v1689_v11 }
 0x3ac   : > { %v1314_v63 = vsel %vm824_vm1, %v2648_v62, 0.0 }
 0x3ad   : > { %1315 = vadd.xlane.f32.xlu0 %v1314_v63  ;;  %v1717_v26 = vand.u32 4294901760, %v1716_v18 }
 0x3af   : > { %v1718_v35 = vsub.f32 %v1716_v18, %v1717_v26 }
 0x3b0   : > { %v1829_v21 = vpop.permute.xlu2 %1828 }
 0x3b1   : > { %v1832_v27 = vsel %vm824_vm1, %v1829_v21, 0  ;;  %v1719_v42 = vand.u32 4294901760, %v1718_v35 }
 0x3b2   : > { %v3239_v34 = vand.u32 4294901760, %v1832_v27 }
 0x3b4   : > { %v3242_v41 = vsub.f32 %v1832_v27, %v3239_v34 }
 0x3b6   : > { %v1877_v44 = vand.u32 4294901760, %v3242_v41 }
 0x3b8   : > { %v1878_v45 = vsub.f32 %v3242_v41, %v1877_v44 }
 0x3ba   : > { %v1879_v46 = vand.u32 4294901760, %v1878_v45 }
 0x3c1   : > { %1492 = vrot.lane.b32.xlu0 %v3202_v28, %s2913_s12 }
 0x420   : > { %v1316_v0 = vpop.xlane.xlu0 %1315 }
 0x421   : > { %2649 = vrcp.f32 %v1316_v0  ;;  %v1328_v6 = vand.u32 2147483648, %v1316_v0  ;;  %v1326_v8 = vand.u32 2147483647, %v1316_v0  ;;  %vm1322_vm7 = vweird.f32 %v1316_v0 }
 0x423   : > { %v1329_v12 = vor.u32 1.1754944e-38, %v1328_v6  ;;  %vm1327_vm9 = vcmp.eq.f32.partialorder %v1326_v8, 8.507059e+37 }
 0x427   : > { %v2650_v1 = vpop.eup %2649 }
 0x428   : > { %v1318_v2 = vmul.f32 %v2650_v1, %v1316_v0  ;;  %vm1323_vm6 = vweird.f32 %v2650_v1 }
 0x429   : > { %vm1324_vm8 = vmor %vm1322_vm7, %vm1323_vm6 }
 0x42a   : > { %v1319_v5 = vsub.f32 1.0, %v1318_v2 }
 0x42c   : > { %v1320_v7 = vmul.f32 %v2650_v1, %v1319_v5 }
 0x42e   : > { %v1321_v10 = vadd.f32 %v2650_v1, %v1320_v7 }
 0x430   : > { %v1325_v15 = vsel %vm1324_vm8, %v2650_v1, %v1321_v10 }
 0x431   : > { %v1330_v16 = vsel %vm1327_vm9, %v1329_v12, %v1325_v15 }
 0x432   : > { %v1331_v17 = vmul.f32 %v2648_v62, %v1330_v16 }
 0x433   : > { %v1493_v19 = vpop.permute.xlu0 %1492 }
 0x434   : > { %v1496_v22 = vsel %vm824_vm1, %v1493_v19, 0  ;;  %v1336_v23 = vsel %vm824_vm1, %v1331_v17, 0 }
 0x435   : > { %v1513_v24 = vand.u32 4294901760, %v1496_v22  ;;  %v1355_v25 = vand.u32 4294901760, %v1336_v23 }
 0x437   : > { %v1540_v29 = vsub.f32 %v1496_v22, %v1513_v24  ;;  %1386 = vmatmul.f32.vlgmr.msrb.gmra.mxu3 %v1355_v25  ;;  %1514 = vmatpush.xpose.msrb.mxu0 %v1513_v24  ;;  %v1356_v30 = vsub.f32 %v1336_v23, %v1355_v25 }
 0x438   : > { %1590 = vmatpush.xpose.msrb.mxu3 %v1513_v24 }
 0x439   : > { %v1541_v32 = vand.u32 4294901760, %v1540_v29  ;;  %1410 = vmatmul.f32.vlgmr.msra.gmra.mxu0 %v1356_v30  ;;  %v1357_v33 = vand.u32 4294901760, %v1356_v30 }
 0x43b   : > { %v1542_v36 = vsub.f32 %v1540_v29, %v1541_v32  ;;  %1434 = vmatmul.f32.vlgmr.msra.gmra.mxu1 %v1357_v33  ;;  %1616 = vmatpush.xpose.msra.mxu0 %v1541_v32  ;;  %v1358_v37 = vsub.f32 %v1356_v30, %v1357_v33 }
 0x43d   : > { %v1543_v39 = vand.u32 4294901760, %v1542_v36  ;;  %v1359_v40 = vand.u32 4294901760, %v1358_v37 }
 0x43f   : > { %1360 = vmatmul.f32.vlgmr.msrb.gmra.mxu2 %v1359_v40  ;;  %1480 = vmatmul.f32.vlgmr.msra.gmra.mxu3 %v1355_v25 }
 0x440   : > { %1544 = vmatpush.xpose.msrb.mxu1 %v1543_v39  ;;  %1567 = vmatpush.xpose.msrb.mxu2 %v1540_v29 }
 0x441   : > { %1720 = vmatpush.msra.mxu3 %v1719_v42  ;;  %1520 = vmatmul.f32.vlgmr.msrb.gmra.mxu0 %v1519_v43 }
 0x442   : > { %1743 = vmatpush.msrb.mxu0 %v1716_v18 }
 0x443   : > { %1546 = vmatmul.f32.vlgmr.msrb.gmra.mxu1 %v1515_v14 }
 0x444   : > { %1638 = vmatpush.xpose.msra.mxu1 %v1513_v24 }
 0x447   : > { %1458 = vmatmul.f32.vlgmr.msra.gmra.mxu2 %v1355_v25  ;;  %1594 = vmatmul.f32.vlgmr.msrb.gmra.mxu3 %v1517_v31 }
 0x448   : > { %1766 = vmatpush.msrb.mxu1 %v1689_v11  ;;  %1690 = vmatpush.msra.mxu2 %v1689_v11 }
 0x449   : > { %1814 = vmatpush.msrb.mxu3 %v1689_v11  ;;  %1618 = vmatmul.f32.vlgmr.msra.gmra.mxu0 %v1515_v14 }
 0x44a   : > { %1850 = vmatpush.xpose.msra.mxu0 %v3239_v34 }
 0x44b   : > { %1640 = vmatmul.f32.vlgmr.msra.gmra.mxu1 %v1515_v14 }
 0x44c   : > { %1880 = vmatpush.xpose.msra.mxu1 %v1879_v46 }
 0x44f   : > { %1570 = vmatmul.f32.vlgmr.msrb.gmra.mxu2 %v1516_v20 }
 0x450   : > { %1792 = vmatpush.msrb.mxu2 %v1717_v26 }
 0x4b6   : > { %v1411_v48 = vpop.f32.mrf.mxu0 }
 0x4b8   : > { %v1435_v50 = vpop.f32.mrf.mxu1 }
 0x4ba   : > { %v1387_v47 = vpop.f32.mrf.mxu3 }
 0x4be   : > { %v1521_v53 = vpop.f32.mrf.mxu0 }
 0x4c0   : > { %v1547_v54 = vpop.f32.mrf.mxu1 }
 0x4c1   : > { %v1548_v55 = vadd.f32 %v1547_v54, %v1521_v53 }
 0x4c2   : > { %v1361_v49 = vpop.f32.mrf.mxu2  ;;  %v1481_v51 = vpop.f32.mrf.mxu3 }
 0x4c3   : > { %v1388_v1 = vadd.f32 %v1387_v47, %v1361_v49 }
 0x4c5   : > { %v1412_v2 = vadd.f32 %v1411_v48, %v1388_v1 }
 0x4c6   : > { %v1619_v60 = vpop.f32.mrf.mxu0 }
 0x4c7   : > { %v1436_v3 = vadd.f32 %v1435_v50, %v1412_v2 }
 0x4c8   : > { %v1641_v62 = vpop.f32.mrf.mxu1 }
 0x4ca   : > { %v1459_v52 = vpop.f32.mrf.mxu2  ;;  %v1595_v58 = vpop.f32.mrf.mxu3 }
 0x4cb   : > { %v1460_v4 = vadd.f32 %v1459_v52, %v1436_v3 }
 0x4cd   : > { %v1482_v5 = vadd.f32 %v1481_v51, %v1460_v4 }
 0x4d2   : > { %v1571_v56 = vpop.f32.mrf.mxu2 }
 0x4d3   : > { %v1572_v57 = vadd.f32 %v1571_v56, %v1548_v55 }
 0x4d5   : > { %v1596_v59 = vadd.f32 %v1595_v58, %v1572_v57 }
 0x4d7   : > { %v1620_v61 = vadd.f32 %v1619_v60, %v1596_v59 }
 0x4d9   : > { %v1642_v63 = vadd.f32 %v1641_v62, %v1620_v61 }
 0x4db   : > { %v1644_v0 = vsel %vm824_vm1, %v1642_v63, -inf }
 0x4dc   : > { %1645 = vmax.xlane.f32.xlu1 %v1644_v0 }
 0x4f5   : > { %1826 = vrot.lane.b32.xlu1 %v3197_v13, %s2915_s19 }
 0x4fd   : > { %1485 = vrot.lane.b32.xlu1 %v1482_v5, %s2916_s22 }
 0x54f   : > { %v1646_v6 = vpop.xlane.xlu1 %1645 }
 0x550   : > { %v1647_v7 = vsub.f32 %v1642_v63, %v1646_v6 }
 0x552   : > { %v1648_v8 = vmul.f32 1.442695, %v1647_v7 }
 0x554   : > { %2651 = vpow2.f32 %v1648_v8 }
 0x55a   : > { %v2652_v9 = vpop.eup %2651 }
 0x55b   : > { %v1650_v10 = vsel %vm824_vm1, %v2652_v9, 0.0 }
 0x55c   : > { %1651 = vadd.xlane.f32.xlu0 %v1650_v10 }
 0x567   : > { %v1827_v11 = vpop.permute.xlu1 %1826 }
 0x568   : > { %v1830_v18 = vsel %vm824_vm1, %v1827_v11, 0 }
 0x569   : > { %v1851_v22 = vand.u32 4294901760, %v1830_v18 }
 0x56b   : > { %v1852_v27 = vsub.f32 %v1830_v18, %v1851_v22 }
 0x56d   : > { %v1853_v31 = vand.u32 4294901760, %v1852_v27 }
 0x56f   : > { %v1486_v12 = vpop.permute.xlu1 %1485  ;;  %v1854_v35 = vsub.f32 %v1852_v27, %v1853_v31 }
 0x570   : > { %1489 = vst.msk [vmem:[#allocation2] sm:$0xff] %vm1488_vm10, %v1486_v12 }
 0x571   : > { %v1855_v38 = vand.u32 4294901760, %v1854_v35 }
 0x5cf   : > { %v1652_v14 = vpop.xlane.xlu0 %1651 }
 0x5d0   : > { %2653 = vrcp.f32 %v1652_v14  ;;  %v1664_v17 = vand.u32 2147483648, %v1652_v14  ;;  %v1662_v20 = vand.u32 2147483647, %v1652_v14  ;;  %vm1658_vm12 = vweird.f32 %v1652_v14 }
 0x5d2   : > { %v1665_v23 = vor.u32 1.1754944e-38, %v1664_v17  ;;  %vm1663_vm14 = vcmp.eq.f32.partialorder %v1662_v20, 8.507059e+37 }
 0x5d6   : > { %v2654_v15 = vpop.eup %2653 }
 0x5d7   : > { %v1654_v13 = vmul.f32 %v2654_v15, %v1652_v14  ;;  %vm1659_vm11 = vweird.f32 %v2654_v15 }
 0x5d8   : > { %vm1660_vm13 = vmor %vm1658_vm12, %vm1659_vm11 }
 0x5d9   : > { %v1655_v16 = vsub.f32 1.0, %v1654_v13 }
 0x5db   : > { %v1656_v19 = vmul.f32 %v2654_v15, %v1655_v16 }
 0x5dd   : > { %v1657_v21 = vadd.f32 %v2654_v15, %v1656_v19 }
 0x5df   : > { %v1661_v24 = vsel %vm1660_vm13, %v2654_v15, %v1657_v21 }
 0x5e0   : > { %v1666_v25 = vsel %vm1663_vm14, %v1665_v23, %v1661_v24 }
 0x5e1   : > { %v1667_v26 = vmul.f32 %v2652_v9, %v1666_v25 }
 0x5e3   : > { %v1672_v29 = vsel %vm824_vm1, %v1667_v26, 0 }
 0x5e4   : > { %v1691_v30 = vand.u32 4294901760, %v1672_v29 }
 0x5e6   : > { %1722 = vmatmul.f32.vlgmr.msra.gmra.mxu3 %v1691_v30  ;;  %v1692_v32 = vsub.f32 %v1672_v29, %v1691_v30 }
 0x5e7   : > { %1926 = vmatpush.xpose.msra.mxu3 %v3239_v34 }
 0x5e8   : > { %1746 = vmatmul.f32.vlgmr.msrb.gmra.mxu0 %v1692_v32  ;;  %v1693_v33 = vand.u32 4294901760, %v1692_v32 }
 0x5e9   : > { %1952 = vmatpush.xpose.msrb.mxu0 %v1877_v44 }
 0x5ea   : > { %1770 = vmatmul.f32.vlgmr.msrb.gmra.mxu1 %v1693_v33  ;;  %v1694_v36 = vsub.f32 %v1692_v32, %v1693_v33 }
 0x5eb   : > { %1974 = vmatpush.xpose.msrb.mxu1 %v3239_v34 }
 0x5ec   : > { %v1695_v37 = vand.u32 4294901760, %v1694_v36 }
 0x5ee   : > { %1696 = vmatmul.f32.vlgmr.msra.gmra.mxu2 %v1695_v37  ;;  %1816 = vmatmul.f32.vlgmr.msrb.gmra.mxu3 %v1691_v30 }
 0x5ef   : > { %1903 = vmatpush.xpose.msra.mxu2 %v3242_v41 }
 0x5f0   : > { %1856 = vmatmul.f32.vlgmr.msra.gmra.mxu0 %v1855_v38 }
 0x5f2   : > { %1882 = vmatmul.f32.vlgmr.msra.gmra.mxu1 %v1851_v22 }
 0x5f6   : > { %1794 = vmatmul.f32.vlgmr.msrb.gmra.mxu2 %v1691_v30  ;;  %1930 = vmatmul.f32.vlgmr.msra.gmra.mxu3 %v1853_v31 }
 0x5f8   : > { %1954 = vmatmul.f32.vlgmr.msrb.gmra.mxu0 %v1851_v22 }
 0x5fa   : > { %1976 = vmatmul.f32.vlgmr.msrb.gmra.mxu1 %v1851_v22 }
 0x5fe   : > { %1906 = vmatmul.f32.vlgmr.msra.gmra.mxu2 %v1852_v27 }
 0x665   : > { %v1747_v40 = vpop.f32.mrf.mxu0 }
 0x667   : > { %v1771_v44 = vpop.f32.mrf.mxu1 }
 0x669   : > { %v1723_v39 = vpop.f32.mrf.mxu3 }
 0x66d   : > { %v1857_v49 = vpop.f32.mrf.mxu0 }
 0x66f   : > { %v1883_v41 = vpop.f32.mrf.mxu1 }
 0x670   : > { %v1884_v51 = vadd.f32 %v1883_v41, %v1857_v49 }
 0x671   : > { %v1697_v42 = vpop.f32.mrf.mxu2  ;;  %v1817_v46 = vpop.f32.mrf.mxu3 }
 0x672   : > { %v1724_v43 = vadd.f32 %v1723_v39, %v1697_v42  ;;  %v2166_v39 = vld [vmem:[#allocation11 + $0x18] sm:$0xff]  ;;  %v2165_v42 = vld [vmem:[#allocation11 + $0x10] sm:$0xff] }
 0x674   : > { %v1748_v45 = vadd.f32 %v1747_v40, %v1724_v43  ;;  %v2186_v40 = vand.u32 4294901760, %v2166_v39 }
 0x675   : > { %v1955_v56 = vpop.f32.mrf.mxu0 }
 0x676   : > { %v1772_v34 = vadd.f32 %v1771_v44, %v1748_v45  ;;  %v2216_v43 = vsub.f32 %v2166_v39, %v2186_v40  ;;  %v2188_v44 = vand.u32 4294901760, %v2165_v42  ;;  %v2164_v45 = vld [vmem:[#allocation11 + $0x8] sm:$0xff] }
 0x677   : > { %v1977_v58 = vpop.f32.mrf.mxu1 }
 0x679   : > { %v1795_v47 = vpop.f32.mrf.mxu2  ;;  %v1931_v54 = vpop.f32.mrf.mxu3 }
 0x67a   : > { %v1796_v48 = vadd.f32 %v1795_v47, %v1772_v34  ;;  %v2217_v34 = vand.u32 4294901760, %v2216_v43  ;;  %v2190_v47 = vand.u32 4294901760, %v2164_v45 }
 0x67c   : > { %v1818_v50 = vadd.f32 %v1817_v46, %v1796_v48  ;;  %v2222_v46 = vsub.f32 %v2165_v42, %v2188_v44  ;;  %v2163_v48 = vld [vmem:[#allocation11] sm:$0xff] }
 0x67d   : > { %v2192_v49 = vand.u32 4294901760, %v2163_v48 }
 0x67e   : > { %1821 = vrot.lane.b32.xlu1 %v1818_v50, %s2917_s14  ;;  %v2218_v50 = vsub.f32 %v2216_v43, %v2217_v34  ;;  %v2223_v41 = vand.u32 4294901760, %v2222_v46 }
 0x681   : > { %v1907_v52 = vpop.f32.mrf.mxu2 }
 0x682   : > { %v1908_v53 = vadd.f32 %v1907_v52, %v1884_v51  ;;  %v2228_v51 = vsub.f32 %v2164_v45, %v2190_v47  ;;  %v2234_v52 = vsub.f32 %v2163_v48, %v2192_v49 }
 0x684   : > { %v1932_v55 = vadd.f32 %v1931_v54, %v1908_v53  ;;  %v2219_v53 = vand.u32 4294901760, %v2218_v50  ;;  %v2224_v54 = vsub.f32 %v2222_v46, %v2223_v41 }
 0x686   : > { %v1956_v57 = vadd.f32 %v1955_v56, %v1932_v55  ;;  %v2229_v55 = vand.u32 4294901760, %v2228_v51  ;;  %v2235_v56 = vand.u32 4294901760, %v2234_v52 }
 0x688   : > { %v1978_v59 = vadd.f32 %v1977_v58, %v1956_v57  ;;  %v2225_v57 = vand.u32 4294901760, %v2224_v54  ;;  %v2230_v58 = vsub.f32 %v2228_v51, %v2229_v55 }
 0x68a   : > { %v1980_v60 = vsel %vm824_vm1, %v1978_v59, -inf }
 0x68b   : > { %1981 = vmax.xlane.f32.xlu2 %v1980_v60  ;;  %v2231_v60 = vand.u32 4294901760, %v2230_v58 }
 0x6f0   : > { %v1822_v61 = vpop.permute.xlu1 %1821 }
 0x6f1   : > { %1825 = vst.msk [vmem:[#allocation2] sm:$0xff] %vm1824_vm15, %v1822_v61 }
 0x6fe   : > { %v1982_v62 = vpop.xlane.xlu2 %1981 }
 0x6ff   : > { %v1983_v63 = vsub.f32 %v1978_v59, %v1982_v62  ;;  %v2236_v59 = vsub.f32 %v2234_v52, %v2235_v56 }
 0x701   : > { %v1984_v0 = vmul.f32 1.442695, %v1983_v63  ;;  %v2237_v61 = vand.u32 4294901760, %v2236_v59 }
 0x703   : > { %2655 = vpow2.f32 %v1984_v0 }
 0x709   : > { %v2656_v1 = vpop.eup %2655 }
 0x70a   : > { %v1986_v2 = vsel %vm824_vm1, %v2656_v1, 0.0 }
 0x70b   : > { %1987 = vadd.xlane.f32.xlu0 %v1986_v2 }
 0x71f   : > { %2004 = vrot.lane.b32.xlu0 %v3202_v28, %s2918_s20 }
 0x77e   : > { %v1988_v3 = vpop.xlane.xlu0 %1987 }
 0x77f   : > { %2657 = vrcp.f32 %v1988_v3  ;;  %v2000_v7 = vand.u32 2147483648, %v1988_v3  ;;  %v1998_v9 = vand.u32 2147483647, %v1988_v3  ;;  %vm1994_vm3 = vweird.f32 %v1988_v3 }
 0x781   : > { %v2001_v11 = vor.u32 1.1754944e-38, %v2000_v7  ;;  %vm1999_vm5 = vcmp.eq.f32.partialorder %v1998_v9, 8.507059e+37 }
 0x785   : > { %v2658_v4 = vpop.eup %2657 }
 0x786   : > { %v1990_v5 = vmul.f32 %v2658_v4, %v1988_v3  ;;  %vm1995_vm2 = vweird.f32 %v2658_v4 }
 0x787   : > { %vm1996_vm4 = vmor %vm1994_vm3, %vm1995_vm2 }
 0x788   : > { %v1991_v6 = vsub.f32 1.0, %v1990_v5 }
 0x78a   : > { %v1992_v8 = vmul.f32 %v2658_v4, %v1991_v6  ;;  %v2642_v6 = vld [vmem:[%s3315_s7] ss:$0 sm:$0xff] }
 0x78c   : > { %v1993_v10 = vadd.f32 %v2658_v4, %v1992_v8 }
 0x78e   : > { %v1997_v12 = vsel %vm1996_vm4, %v2658_v4, %v1993_v10 }
 0x78f   : > { %v2002_v14 = vsel %vm1999_vm5, %v2001_v11, %v1997_v12 }
 0x790   : > { %v2003_v15 = vmul.f32 %v2656_v1, %v2002_v14 }
 0x791   : > { %v2005_v13 = vpop.permute.xlu0 %2004 }
 0x792   : > { %v2025_v16 = vand.u32 4294901760, %v2005_v13  ;;  %v2008_v28 = vsel %vm824_vm1, %v2003_v15, 0  ;;  %vm2160_vm1 = vcmask 261312  }
 0x793   : > { %v2027_v17 = vand.u32 4294901760, %v2008_v28 }
 0x794   : > { %v2052_v18 = vsub.f32 %v2005_v13, %v2025_v16  ;;  %2026 = vmatpush.msrb.mxu2 %v2025_v16  ;;  %2102 = vmatpush.msra.mxu1 %v2025_v16 }
 0x795   : > { %v2028_v19 = vsub.f32 %v2008_v28, %v2027_v17 }
 0x796   : > { %v2053_v20 = vand.u32 4294901760, %v2052_v18  ;;  %2079 = vmatpush.msra.mxu0 %v2052_v18  ;;  %2220 = vmatpush.msrb.mxu1 %v2219_v53 }
 0x797   : > { %2082 = vmatmul.f32.vlgmr.msra.gmra.mxu0 %v2028_v19  ;;  %v2029_v21 = vand.u32 4294901760, %v2028_v19 }
 0x798   : > { %v2054_v22 = vsub.f32 %v2052_v18, %v2053_v20  ;;  %2128 = vmatpush.msra.mxu2 %v2053_v20  ;;  %2187 = vmatpush.msrb.mxu0 %v2186_v40 }
 0x799   : > { %2106 = vmatmul.f32.vlgmr.msra.gmra.mxu1 %v2029_v21  ;;  %v2030_v23 = vsub.f32 %v2028_v19, %v2029_v21 }
 0x79a   : > { %v2055_v24 = vand.u32 4294901760, %v2054_v22  ;;  %2189 = vmatpush.msrb.mxu0 %v2188_v44  ;;  %2226 = vmatpush.msrb.mxu1 %v2225_v57 }
 0x79b   : > { %v2031_v25 = vand.u32 4294901760, %v2030_v23 }
 0x79c   : > { %2056 = vmatpush.msrb.mxu3 %v2055_v24  ;;  %2191 = vmatpush.msrb.mxu0 %v2190_v47 }
 0x79d   : > { %2032 = vmatmul.f32.vlgmr.msrb.gmra.mxu2 %v2031_v25  ;;  %2058 = vmatmul.f32.vlgmr.msrb.gmra.mxu3 %v2027_v17 }
 0x79e   : > { %2150 = vmatpush.msra.mxu3 %v2025_v16  ;;  %2258 = vmatpush.msrb.mxu2 %v2216_v43 }
 0x79f   : > { %2193 = vmatpush.msrb.mxu0 %v2192_v49  ;;  %2232 = vmatpush.msrb.mxu1 %v2231_v60 }
 0x7a0   : > { %2287 = vmatpush.msrb.mxu3 %v2186_v40  ;;  %2261 = vmatpush.msrb.mxu2 %v2222_v46 }
 0x7a1   : > { %2316 = vmatpush.msra.mxu0 %v2217_v34  ;;  %2238 = vmatpush.msrb.mxu1 %v2237_v61 }
 0x7a2   : > { %2289 = vmatpush.msrb.mxu3 %v2188_v44  ;;  %2264 = vmatpush.msrb.mxu2 %v2228_v51 }
 0x7a3   : > { %2320 = vmatpush.msra.mxu0 %v2223_v41  ;;  %2347 = vmatpush.msra.mxu1 %v2186_v40 }
 0x7a4   : > { %2291 = vmatpush.msrb.mxu3 %v2190_v47  ;;  %2267 = vmatpush.msrb.mxu2 %v2234_v52 }
 0x7a5   : > { %2130 = vmatmul.f32.vlgmr.msra.gmra.mxu2 %v2027_v17  ;;  %2152 = vmatmul.f32.vlgmr.msra.gmra.mxu3 %v2027_v17 }
 0x7a6   : > { %2293 = vmatpush.msrb.mxu3 %v2192_v49  ;;  %2324 = vmatpush.msra.mxu0 %v2229_v55 }
 0x7a7   : > { %2349 = vmatpush.msra.mxu1 %v2188_v44 }
 0x7a8   : > { %2328 = vmatpush.msra.mxu0 %v2235_v56 }
 0x7a9   : > { %2351 = vmatpush.msra.mxu1 %v2190_v47 }
 0x7ab   : > { %2353 = vmatpush.msra.mxu1 %v2192_v49 }
 0x814   : > { %v2083_v30 = vpop.f32.mrf.mxu0 }
 0x816   : > { %v2107_v32 = vpop.f32.mrf.mxu1 }
 0x820   : > { %v2033_v26 = vpop.f32.mrf.mxu2  ;;  %v2059_v27 = vpop.f32.mrf.mxu3 }
 0x821   : > { %v2060_v29 = vadd.f32 %v2059_v27, %v2033_v26 }
 0x823   : > { %v2084_v31 = vadd.f32 %v2083_v30, %v2060_v29 }
 0x825   : > { %v2108_v33 = vadd.f32 %v2107_v32, %v2084_v31 }
 0x828   : > { %v2131_v35 = vpop.f32.mrf.mxu2  ;;  %v2153_v37 = vpop.f32.mrf.mxu3 }
 0x829   : > { %v2132_v36 = vadd.f32 %v2131_v35, %v2108_v33 }
 0x82b   : > { %v2154_v38 = vadd.f32 %v2153_v37, %v2132_v36 }
 0x82d   : > { %2157 = vrot.lane.b32.xlu0 %v2154_v38, %s2919_s16 }
 0x89f   : > { %v2158_v62 = vpop.permute.xlu0 %2157 }
 0x8a0   : > { %2161 = vst.msk [vmem:[#allocation2] sm:$0xff] %vm2160_vm1, %v2158_v62 }
 0x8a7   : > { %v2162_v63 = vld [vmem:[#allocation2] sm:$0xff] }
 0x8a8   : > { %v2172_v0 = vsel %vm438_vm0, %v2162_v63, 0 }
 0x8a9   : > { %v2194_v1 = vand.u32 4294901760, %v2172_v0 }
 0x8ab   : > { %2240 = vmatmul.f32.vlgmr.msrb.gmra.mxu1 %v2194_v1  ;;  %v2195_v2 = vsub.f32 %v2172_v0, %v2194_v1 }
 0x8ad   : > { %2270 = vmatmul.f32.vlgmr.msrb.gmra.mxu2 %v2195_v2  ;;  %v2196_v3 = vand.u32 4294901760, %v2195_v2 }
 0x8af   : > { %2297 = vmatmul.f32.vlgmr.msrb.gmra.mxu3 %v2196_v3  ;;  %v2197_v4 = vsub.f32 %v2195_v2, %v2196_v3 }
 0x8b1   : > { %v2198_v5 = vand.u32 4294901760, %v2197_v4 }
 0x8b3   : > { %2199 = vmatmul.f32.vlgmr.msrb.gmra.mxu0 %v2198_v5  ;;  %2355 = vmatmul.f32.vlgmr.msra.gmra.mxu1 %v2194_v1 }
 0x8bb   : > { %2330 = vmatmul.f32.vlgmr.msra.gmra.mxu0 %v2194_v1 }
 0x928   : > { %v2241_v7 = vpop.f32.mrf.mxu1 }
 0x930   : > { %v2200_v8 = vpop.f32.mrf.mxu0  ;;  %v2271_v11 = vpop.f32.mrf.mxu2 }
 0x931   : > { %v2201_v9 = vadd.f32 %v2642_v6, %v2200_v8  ;;  %v2356_v28 = vpop.f32.mrf.mxu1 }
 0x932   : > { %v2298_v14 = vpop.f32.mrf.mxu3 }
 0x933   : > { %v2242_v10 = vadd.f32 %v2241_v7, %v2201_v9 }
 0x935   : > { %v2272_v12 = vadd.f32 %v2271_v11, %v2242_v10 }
 0x937   : > { %v2299_v15 = vadd.f32 %v2298_v14, %v2272_v12 }
 0x938   : > { %v2331_v13 = vpop.f32.mrf.mxu0 }
 0x939   : > { %v2332_v16 = vadd.f32 %v2331_v13, %v2299_v15 }
 0x93b   : > { %v2357_v17 = vadd.f32 %v2356_v28, %v2332_v16 }
 0x93d   : > { %2359 = vst.msk [vmem:[%s427_s15] sm:$0xff] %vm438_vm0, %v2357_v17 }
 0x93e   : > { %2836 = shalt.err (!%p2833_p13)
}
 0x93f   : > { %2546 = dma.vmem_to_hbm [thread:$0]  (%p3052_p4), %s2375_s17, 128, %s2377_s18, %s2361_s30  }
 0x940 PF: > { %s3340_s21 = sld [smem:[#allocation18_spill]]  ;;  %p2566_p0 = pnand %p2514_p6, %p3060_p7 }
 0x942   : > { %p2567_p2 = pneg %p2566_p0 }
 0x946   : > { %s2388_s14 = sand.u32 1, %s3340_s21  }
 0x947   : > { %s2389_s20 = scalar_lea.sflag [#allocation5], %s2388_s14 }
 0x948   : > { %2878 = dma.done.wait (%p2567_p2), %s2389_s20, 128  }
 0x949   : > { %2880 = vsyncadd (%p2567_p2), %s2389_s20, 4294967168  ;;  %s28_s10 = sadd.s32 1, %s2903_s10   ;;  %s3342_s16 = sld [smem:[#allocation19_spill]] }
 0x94a   : > { %p25_p5 = scmp.ge.s32.totalorder %s28_s10, 4   ;;  %s3343_s29 = sld [smem:[#allocation22_spill]] }
 0x94b   : > { %s3344_s30 = sld [smem:[#allocation20_spill]]  ;;  %s3346_s27 = smov %s2887_s28 }
 0x94c   : > { %s3345_s9 = sld [smem:[#allocation21_spill]]  ;;  %27 = sbr.rel (!%p25_p5) target bundleno = 13 (0xd), region = 122 }
 0x94f   : > { %s3347_s28 = smov %s3342_s16 }
 0x951   :  { %2395 = vsyncpa [#allocation4], 1 }
 0x952   :  { %2397 = vsyncpa [#allocation4 + $0x1], 1 }
 0x953   :  { %2398 = vsyncpa [#allocation7], 1 }
 0x954   :  { %2400 = vsyncpa [#allocation7 + $0x1], 1 }
 0x955   :  { %2401 = vsyncpa [#allocation10], 1 }
 0x956   :  { %2402 = vsyncpa [#allocation5], 1 }
 0x957   :  { %2404 = vsyncpa [#allocation5 + $0x1], 1 }

</bundles_post_ra>
